<compile_context>
chip_gen: v6e
topology: v6e:2x2x1
jax: 0.10.0
libtpu: 0.0.40
codegen_flags: <defaults>
</compile_context>

<pallas_src>
import jax
import jax.numpy as jnp
from jax.experimental import pallas as pl
from jax.experimental.pallas import tpu as pltpu

# PyTorch module widths (fixed in the reference Critic).
HIDDEN1 = 400          # fc1: Linear(num_inputs, 400)
HIDDEN2 = 300          # fc2[0]: Linear(400 + num_actions, 300)

# Lane-dense padded widths (multiples of 128 lanes).
H1_PAD = 512           # 400 fc1 columns + up to 112 action-passthrough columns
H2_PAD = 384
OUT_PAD = 128          # final Linear(300, 1) padded to 128 output lanes (col 0 real)


def _round_up(x, m):
    return (x + m - 1) // m * m


# ----------------------------------------------------------------------------- kernel
def _critic_kernel(xa_ref, w1_ref, b1_ref, pass_ref, w2_ref, b2_ref, w3_ref, b3_ref,
                   o_ref):
    # Augmented fc1: [x | a] @ [W1 | action-identity].  bf16 operands, f32 accumulation.
    # Columns 0..399 are the real fc1 pre-activation, columns 400..400+na-1 carry the
    # raw (bf16) action values via identity routing, remaining columns are exactly 0.
    h1 = jnp.dot(xa_ref[...], w1_ref[...],
                 preferred_element_type=jnp.float32) + b1_ref[...]
    # ReLU only on the 400 real fc1 columns; action-passthrough columns keep their sign.
    # pass_ref is 1.0 on passthrough columns, 0.0 elsewhere:
    #   max(x, x*1) = x (passthrough),  max(x, x*0) = relu(x) (fc1 columns / padding).
    h1 = jnp.maximum(h1, h1 * pass_ref[...])

    # fc2[0]: Linear(400 + na, 300) + ReLU, as a single 512-wide matmul (padded rows of
    # W2 are zero, so the padding contributes nothing).
    h2 = jnp.dot(h1.astype(jnp.bfloat16), w2_ref[...],
                 preferred_element_type=jnp.float32)
    h2 = jnp.maximum(h2 + b2_ref[...], 0.0)

    # fc2[2]: Linear(300, 1).  W3 is zero-padded to 128 output lanes so the MXU emits a
    # lane-dense (bb, 128) tile whose column 0 is the critic value.  Compact it 128x:
    # transpose each 128x128 block on the XLU (otherwise idle here) and keep sublane 0.
    val = jnp.dot(h2.astype(jnp.bfloat16), w3_ref[...],
                  preferred_element_type=jnp.float32)          # (bb, 128)
    bb = val.shape[0]
    g = bb // 128
    vt = jnp.transpose(val.reshape(g, 128, 128), (0, 2, 1))    # XLU block transposes
    o_ref[...] = vt[:, 0, :] + b3_ref[...]                     # (g, 128) lane-dense f32


# ----------------------------------------------------------------------------- params
def init_params(key, num_inputs, num_actions):
    """Raw (module-shaped) params mimicking PyTorch Linear default init."""
    def linear(k, fan_in, fan_out):
        kw, kb = jax.random.split(k)
        bound = 1.0 / jnp.sqrt(jnp.float32(fan_in))
        w = jax.random.uniform(kw, (fan_in, fan_out), jnp.float32, -bound, bound)
        b = jax.random.uniform(kb, (1, fan_out), jnp.float32, -bound, bound)
        return w, b

    k1, k2, k3 = jax.random.split(key, 3)
    w1, b1 = linear(k1, num_inputs, HIDDEN1)
    w2, b2 = linear(k2, HIDDEN1 + num_actions, HIDDEN2)
    w3, b3 = linear(k3, HIDDEN2, 1)
    return dict(w1=w1, b1=b1, w2=w2, b2=b2, w3=w3, b3=b3)


def prepare_params(params, num_actions):
    """One-time padding / augmentation / bf16 cast of the weights for the kernel.

    Zero padding is exactly neutral (relu(0+0)=0, padded W2/W3 rows are zero).  The
    identity rows that route actions into h1 columns 400..400+na-1 are exact in bf16,
    and those columns bypass ReLU via the passthrough mask, so the fused formulation is
    numerically identical to the concat-then-matmul module.
    """
    w1, b1, w2, b2, w3, b3 = (params[k] for k in ("w1", "b1", "w2", "b2", "w3", "b3"))
    num_inputs = w1.shape[0]
    assert HIDDEN1 + num_actions <= H1_PAD, "too many actions for H1_PAD passthrough"
    k_aug = num_inputs + num_actions
    f32, bf16 = jnp.float32, jnp.bfloat16

    # Augmented fc1 weight: rows 0..ni-1 = W1 into cols 0..399; rows ni..ni+na-1 route
    # the actions into cols 400..400+na-1 via an identity block.
    w1a = jnp.zeros((k_aug, H1_PAD), f32)
    w1a = w1a.at[:num_inputs, :HIDDEN1].set(w1)
    w1a = w1a.at[num_inputs:, HIDDEN1:HIDDEN1 + num_actions].set(
        jnp.eye(num_actions, dtype=f32))
    w1a = w1a.astype(bf16)                                   # 0.0 / 1.0 exact in bf16
    b1a = jnp.zeros((1, H1_PAD), f32).at[:, :HIDDEN1].set(b1)

    # Passthrough mask: 1.0 on action columns (skip ReLU), 0.0 elsewhere.
    passthru = jnp.zeros((1, H1_PAD), f32).at[:, HIDDEN1:HIDDEN1 + num_actions].set(1.0)

    # fc2 weight on the augmented 512-wide h1.
    w2a = jnp.zeros((H1_PAD, H2_PAD), f32)
    w2a = w2a.at[:HIDDEN1, :HIDDEN2].set(w2[:HIDDEN1, :])
    w2a = w2a.at[HIDDEN1:HIDDEN1 + num_actions, :HIDDEN2].set(w2[HIDDEN1:, :])
    w2a = w2a.astype(bf16)
    b2p = jnp.zeros((1, H2_PAD), f32).at[:, :HIDDEN2].set(b2)

    w3p = jnp.zeros((H2_PAD, OUT_PAD), f32).at[:HIDDEN2, :1].set(w3).astype(bf16)
    # After output compaction every lane of the compacted row needs +b3 (scalar).
    b3p = jnp.full((1, OUT_PAD), b3[0, 0], f32)

    return dict(w1=w1a, b1=b1a, passthru=passthru, w2=w2a, b2=b2p, w3=w3p, b3=b3p)


# ----------------------------------------------------------------------------- forward
def critic_forward(inputs, actions, pparams, *, batch_block=1024):
    """inputs: (B, num_inputs) f32, actions: (B, num_actions) f32 -> (B, 1) f32."""
    B, num_inputs = inputs.shape
    num_actions = actions.shape[1]
    k_aug = num_inputs + num_actions
    assert pparams["w1"].shape[0] == k_aug, "params/actions width mismatch"

    # Single merged bf16 obs||action stream (one kernel DMA stream, no in-kernel casts,
    # half the input bytes).  In a real DDPG training loop, build this tensor where the
    # replay buffer materializes obs/actions so this cast costs nothing extra.
    xa = jnp.concatenate([inputs, actions], axis=1)
    B128 = _round_up(B, 128)
    if B128 != B:
        xa = jnp.pad(xa, ((0, B128 - B), (0, 0)))   # <=127 rows; fused with the cast
    xa = xa.astype(jnp.bfloat16)

    # Batch tile: single tile for small batches; otherwise a multiple of 1024 rows so the
    # compacted output block (bb//128, 128) keeps a sublane-aligned height.  Ragged
    # batches rely on Pallas's partial last block (no full-batch jnp.pad copy).
    # On v7x the ("parallel",) grid is split across both TensorCores once B >= 2*bb.
    if B128 <= batch_block:
        bb = B128
    else:
        bb = max(1024, _round_up(batch_block, 1024))
    g = bb // 128
    grid = pl.cdiv(B128, bb)

    def tiled(shape):          # batch-tiled operand / output
        return pl.BlockSpec(shape, lambda i: (i, 0))

    def resident(shape):       # weights: same block every step -> stay resident in VMEM
        return pl.BlockSpec(shape, lambda i: (0, 0))

    out = pl.pallas_call(
        _critic_kernel,
        out_shape=jax.ShapeDtypeStruct((B128 // 128, 128), jnp.float32),
        grid_spec=pltpu.PrefetchScalarGridSpec(
            num_scalar_prefetch=0,
            grid=(grid,),
            in_specs=[
                tiled((bb, k_aug)),
                resident((k_aug, H1_PAD)),
                resident((1, H1_PAD)),
                resident((1, H1_PAD)),
                resident((H1_PAD, H2_PAD)),
                resident((1, H2_PAD)),
                resident((H2_PAD, OUT_PAD)),
                resident((1, OUT_PAD)),
            ],
            out_specs=tiled((g, 128)),
        ),
        compiler_params=pltpu.CompilerParams(
            dimension_semantics=("parallel",),
            # bb=1024 (~6-7 MiB/step) fits every chip's default scoped VMEM; only larger
            # tiles need the limit raised.
            vmem_limit_bytes=(48 * 1024 * 1024) if bb > 1024 else None,
        ),
    )(xa, pparams["w1"], pparams["b1"], pparams["passthru"],
      pparams["w2"], pparams["b2"], pparams["w3"], pparams["b3"])

    # Compacted output is in batch order: element (r, l) is batch row r*128 + l.
    return out.reshape(-1, 1)[:B]


# ----------------------------------------------------------------------------- refs
def critic_reference(inputs, actions, params):
    """Pure-f32 reference matching the PyTorch module exactly."""
    h1 = jnp.maximum(inputs @ params["w1"] + params["b1"], 0.0)
    cat = jnp.concatenate([h1, actions], axis=1)
    h2 = jnp.maximum(cat @ params["w2"] + params["b2"], 0.0)
    return h2 @ params["w3"] + params["b3"]


def critic_reference_bf16(inputs, actions, params):
    """Reference with the same bf16-operand / f32-accumulate numerics as the kernel."""
    def mm(a, b):
        return jnp.dot(a.astype(jnp.bfloat16), b.astype(jnp.bfloat16),
                       preferred_element_type=jnp.float32)
    h1 = jnp.maximum(mm(inputs, params["w1"]) + params["b1"], 0.0)
    h2 = jnp.maximum(mm(h1, params["w2"][:HIDDEN1, :])
                     + mm(actions, params["w2"][HIDDEN1:, :])
                     + params["b2"], 0.0)
    return mm(h2, params["w3"]) + params["b3"]


# ----------------------------------------------------------------------------- demo
if __name__ == "__main__":
    key = jax.random.PRNGKey(0)
    kp, kx, ka = jax.random.split(key, 3)

    batch = 8
    num_inputs = 16     # observation dim
    num_actions = 4     # action_space.shape[0]

    raw_params = init_params(kp, num_inputs, num_actions)
    pparams = prepare_params(raw_params, num_actions)

    inputs = jax.random.normal(kx, (batch, num_inputs), jnp.float32)
    actions = jax.random.normal(ka, (batch, num_actions), jnp.float32)

    fwd = jax.jit(critic_forward)
    out = fwd(inputs, actions, pparams)
    out = jax.block_until_ready(out)
    assert out.shape == (batch, 1)

    # Tight check vs. a reference with matching bf16-matmul numerics.
    ref_bf16 = critic_reference_bf16(inputs, actions, raw_params)
    assert jnp.allclose(out, ref_bf16, atol=2e-3, rtol=2e-3), \
        f"bf16-matched mismatch: {jnp.max(jnp.abs(out - ref_bf16))}"

    # Sanity check vs. the exact f32 module semantics (bf16 operand rounding only).
    ref_f32 = critic_reference(inputs, actions, raw_params)
    assert jnp.allclose(out, ref_f32, atol=5e-2, rtol=5e-2), \
        f"f32 reference mismatch: {jnp.max(jnp.abs(out - ref_f32))}"

    print("KERNEL_OK")
</pallas_src>

<mosaic_0001>
module attributes {stable_mosaic.version = 11 : i64} {
  func.func @_critic_kernel(%arg0: i32, %arg1: memref<128x20xbf16, #tpu.memory_space<vmem>>, %arg2: memref<20x512xbf16, #tpu.memory_space<vmem>>, %arg3: memref<1x512xf32, #tpu.memory_space<vmem>>, %arg4: memref<1x512xf32, #tpu.memory_space<vmem>>, %arg5: memref<512x384xbf16, #tpu.memory_space<vmem>>, %arg6: memref<1x384xf32, #tpu.memory_space<vmem>>, %arg7: memref<384x128xbf16, #tpu.memory_space<vmem>>, %arg8: memref<1x128xf32, #tpu.memory_space<vmem>>, %arg9: memref<1x128xf32, #tpu.memory_space<vmem>>) attributes {dimension_semantics = [#tpu.dimension_semantics<parallel>], iteration_bounds = array<i64: 1>, scalar_prefetch = 0 : i64, scratch_operands = 0 : i64, tpu.core_type = #tpu.core_type<tc>, window_params = [{transform_indices = @transform_0, window_bounds = array<i64: 128, 20>}, {pipeline_mode = #tpu.pipeline_mode<synchronous>, transform_indices = @transform_1, window_bounds = array<i64: 20, 512>}, {pipeline_mode = #tpu.pipeline_mode<synchronous>, transform_indices = @transform_2, window_bounds = array<i64: 1, 512>}, {pipeline_mode = #tpu.pipeline_mode<synchronous>, transform_indices = @transform_3, window_bounds = array<i64: 1, 512>}, {pipeline_mode = #tpu.pipeline_mode<synchronous>, transform_indices = @transform_4, window_bounds = array<i64: 512, 384>}, {pipeline_mode = #tpu.pipeline_mode<synchronous>, transform_indices = @transform_5, window_bounds = array<i64: 1, 384>}, {pipeline_mode = #tpu.pipeline_mode<synchronous>, transform_indices = @transform_6, window_bounds = array<i64: 384, 128>}, {pipeline_mode = #tpu.pipeline_mode<synchronous>, transform_indices = @transform_7, window_bounds = array<i64: 1, 128>}, {transform_indices = @transform_8, window_bounds = array<i64: 1, 128>}]} {
    %c0 = arith.constant 0 : index
    %c0_0 = arith.constant 0 : index
    %0 = vector.load %arg1[%c0, %c0_0] : memref<128x20xbf16, #tpu.memory_space<vmem>>, vector<128x20xbf16>
    %c0_1 = arith.constant 0 : index
    %c0_2 = arith.constant 0 : index
    %1 = vector.load %arg2[%c0_1, %c0_2] : memref<20x512xbf16, #tpu.memory_space<vmem>>, vector<20x512xbf16>
    %cst = arith.constant dense<0.000000e+00> : vector<128x512xf32>
    %2 = tpu.matmul %0, %1, %cst {dimension_numbers = #tpu.dot_dimension_numbers<[1], [0], [0], [1], [0, 0, 1, 1], [], []>} : vector<128x20xbf16>, vector<20x512xbf16>, vector<128x512xf32> -> vector<128x512xf32>
    %c0_3 = arith.constant 0 : index
    %c0_4 = arith.constant 0 : index
    %3 = vector.load %arg3[%c0_3, %c0_4] : memref<1x512xf32, #tpu.memory_space<vmem>>, vector<1x512xf32>
    %4 = vector.broadcast %3 : vector<1x512xf32> to vector<128x512xf32>
    %5 = arith.addf %2, %4 : vector<128x512xf32>
    %c0_5 = arith.constant 0 : index
    %c0_6 = arith.constant 0 : index
    %6 = vector.load %arg4[%c0_5, %c0_6] : memref<1x512xf32, #tpu.memory_space<vmem>>, vector<1x512xf32>
    %7 = vector.broadcast %6 : vector<1x512xf32> to vector<128x512xf32>
    %8 = arith.mulf %5, %7 : vector<128x512xf32>
    %9 = arith.maximumf %5, %8 : vector<128x512xf32>
    %10 = arith.truncf %9 : vector<128x512xf32> to vector<128x512xbf16>
    %c0_7 = arith.constant 0 : index
    %c0_8 = arith.constant 0 : index
    %11 = vector.load %arg5[%c0_7, %c0_8] : memref<512x384xbf16, #tpu.memory_space<vmem>>, vector<512x384xbf16>
    %cst_9 = arith.constant dense<0.000000e+00> : vector<128x384xf32>
    %12 = tpu.matmul %10, %11, %cst_9 {dimension_numbers = #tpu.dot_dimension_numbers<[1], [0], [0], [1], [0, 0, 1, 1], [], []>} : vector<128x512xbf16>, vector<512x384xbf16>, vector<128x384xf32> -> vector<128x384xf32>
    %c0_10 = arith.constant 0 : index
    %c0_11 = arith.constant 0 : index
    %13 = vector.load %arg6[%c0_10, %c0_11] : memref<1x384xf32, #tpu.memory_space<vmem>>, vector<1x384xf32>
    %14 = vector.broadcast %13 : vector<1x384xf32> to vector<128x384xf32>
    %15 = arith.addf %12, %14 : vector<128x384xf32>
    %cst_12 = arith.constant 0.000000e+00 : f32
    %16 = vector.broadcast %cst_12 : f32 to vector<128x384xf32>
    %17 = arith.maximumf %15, %16 : vector<128x384xf32>
    %18 = arith.truncf %17 : vector<128x384xf32> to vector<128x384xbf16>
    %c0_13 = arith.constant 0 : index
    %c0_14 = arith.constant 0 : index
    %19 = vector.load %arg7[%c0_13, %c0_14] : memref<384x128xbf16, #tpu.memory_space<vmem>>, vector<384x128xbf16>
    %cst_15 = arith.constant dense<0.000000e+00> : vector<128x128xf32>
    %20 = tpu.matmul %18, %19, %cst_15 {dimension_numbers = #tpu.dot_dimension_numbers<[1], [0], [0], [1], [0, 0, 1, 1], [], []>} : vector<128x384xbf16>, vector<384x128xbf16>, vector<128x128xf32> -> vector<128x128xf32>
    %21 = vector.shape_cast %20 : vector<128x128xf32> to vector<1x128x128xf32>
    %22 = tpu.transpose %21, [0, 2, 1] : vector<1x128x128xf32> -> vector<1x128x128xf32>
    %23 = vector.extract_strided_slice %22 {offsets = [0, 0, 0], sizes = [1, 1, 128], strides = [1, 1, 1]} : vector<1x128x128xf32> to vector<1x1x128xf32>
    %24 = vector.shape_cast %23 : vector<1x1x128xf32> to vector<1x128xf32>
    %c0_16 = arith.constant 0 : index
    %c0_17 = arith.constant 0 : index
    %25 = vector.load %arg8[%c0_16, %c0_17] : memref<1x128xf32, #tpu.memory_space<vmem>>, vector<1x128xf32>
    %26 = arith.addf %24, %25 : vector<1x128xf32>
    %c0_18 = arith.constant 0 : index
    %c0_19 = arith.constant 0 : index
    %27 = vector.load %arg9[%c0_18, %c0_19] : memref<1x128xf32, #tpu.memory_space<vmem>>, vector<1x128xf32>
    tpu.vector_store %arg9[%c0_18, %c0_19], %26 {strides = array<i32>} : memref<1x128xf32, #tpu.memory_space<vmem>>, vector<1x128xf32>,
    return
  }
  func.func @transform_0(%arg0: i32) -> (i32, i32) {
    %c0_i32 = arith.constant 0 : i32
    %c0_i32_0 = arith.constant 0 : i32
    return %arg0, %c0_i32 : i32, i32
  }
  func.func @transform_1(%arg0: i32) -> (i32, i32) {
    %c0_i32 = arith.constant 0 : i32
    %c0_i32_0 = arith.constant 0 : i32
    %c0_i32_1 = arith.constant 0 : i32
    return %c0_i32, %c0_i32_0 : i32, i32
  }
  func.func @transform_2(%arg0: i32) -> (i32, i32) {
    %c0_i32 = arith.constant 0 : i32
    %c0_i32_0 = arith.constant 0 : i32
    %c0_i32_1 = arith.constant 0 : i32
    return %c0_i32, %c0_i32_0 : i32, i32
  }
  func.func @transform_3(%arg0: i32) -> (i32, i32) {
    %c0_i32 = arith.constant 0 : i32
    %c0_i32_0 = arith.constant 0 : i32
    %c0_i32_1 = arith.constant 0 : i32
    return %c0_i32, %c0_i32_0 : i32, i32
  }
  func.func @transform_4(%arg0: i32) -> (i32, i32) {
    %c0_i32 = arith.constant 0 : i32
    %c0_i32_0 = arith.constant 0 : i32
    %c0_i32_1 = arith.constant 0 : i32
    return %c0_i32, %c0_i32_0 : i32, i32
  }
  func.func @transform_5(%arg0: i32) -> (i32, i32) {
    %c0_i32 = arith.constant 0 : i32
    %c0_i32_0 = arith.constant 0 : i32
    %c0_i32_1 = arith.constant 0 : i32
    return %c0_i32, %c0_i32_0 : i32, i32
  }
  func.func @transform_6(%arg0: i32) -> (i32, i32) {
    %c0_i32 = arith.constant 0 : i32
    %c0_i32_0 = arith.constant 0 : i32
    %c0_i32_1 = arith.constant 0 : i32
    return %c0_i32, %c0_i32_0 : i32, i32
  }
  func.func @transform_7(%arg0: i32) -> (i32, i32) {
    %c0_i32 = arith.constant 0 : i32
    %c0_i32_0 = arith.constant 0 : i32
    %c0_i32_1 = arith.constant 0 : i32
    return %c0_i32, %c0_i32_0 : i32, i32
  }
  func.func @transform_8(%arg0: i32) -> (i32, i32) {
    %c0_i32 = arith.constant 0 : i32
    %c0_i32_0 = arith.constant 0 : i32
    return %arg0, %c0_i32 : i32, i32
  }
}

</mosaic_0001>

<bundles_post_ra>
// kernel: critic_forward.1
= control target key start
LH: loop header
LB: loop body
LE: loop exit
PB: predicated region body
PF: predicated region fallthrough
CT: control target
= control target key end

     0   :  { %13 = vsyncpa [#allocation3], 0  ;;  %s3402_s0 = inlined_call_operand.vmem [shape: bf16[128,20], index: 0, kind: input, shape index: {}]   ;;  %s3403_s1 = inlined_call_operand.vmem [shape: bf16[20,512], index: 1, kind: input, shape index: {}]   ;;  %s3404_s2 = inlined_call_operand.vmem [shape: f32[1,512], index: 2, kind: input, shape index: {}]   ;;  %s3405_s3 = inlined_call_operand.vmem [shape: f32[1,512], index: 3, kind: input, shape index: {}]   ;;  %s3406_s4 = inlined_call_operand.hbm [shape: bf16[512,384], index: 4, kind: input, shape index: {}]   ;;  %s3407_s5 = inlined_call_operand.vmem [shape: f32[1,384], index: 5, kind: input, shape index: {}]   ;;  %s3408_s6 = inlined_call_operand.hbm [shape: bf16[384,128], index: 6, kind: input, shape index: {}]   ;;  %s3409_s7 = inlined_call_operand.vmem [shape: f32[1,128], index: 7, kind: input, shape index: {}]   ;;  %s3410_s8 = inlined_call_operand.vmem [shape: f32[1,128], index: 8, kind: output, shape index: {}]  }
   0x1   :  { %14 = vsyncpa [#allocation5], 0  ;;  %s2809_s27 = smov [#allocation2]  }
   0x2   :  { %s28_s28 = sshll.u32 %s2809_s27, 4  ;;  %s29_s28 = int_to_ptr.vmem [resolvable:$true] %s28_s28 }
   0x3   :  { %s2773_s29 = scalar_lea.vmem %s29_s28, 12288  ;;  %p2778_p1 = scmp.lt.s32.totalorder %s29_s28, %s29_s28 }
   0x4   :  { %p2774_p0 = scmp.ne.s32.totalorder %s29_s28, %s2773_s29  ;;  %p2779_p2 = scmp.lt.s32.totalorder %s2773_s29, %s2773_s29 }
   0x6   :  { %p2780_p3 = por %p2779_p2, %p2778_p1 }
   0x8   :  { %p2781_p4 = pnand %p2780_p3, %p2774_p0 }
   0xa   :  { %2784 = shalt.err (!%p2781_p4)
}
   0xb   :  { %s2810_s30 = smov 192   ;;  %s2811_s9 = smov 12  }
   0xc   :  { %34 = dma.hbm_to_vmem [thread:$0]  %s3406_s4, 12288, %s29_s28, [#allocation3], %s2810_s30, %s2810_s30, %s2811_s9  }
   0xd   :  { %s2812_s12 = smov [#allocation4]  }
   0xe   :  { %s42_s13 = sshll.u32 %s2812_s12, 4  ;;  %s43_s13 = int_to_ptr.vmem [resolvable:$true] %s42_s13 }
   0xf   :  { %s2793_s14 = scalar_lea.vmem %s43_s13, 3072  ;;  %p2798_p6 = scmp.lt.s32.totalorder %s43_s13, %s43_s13 }
  0x10   :  { %p2794_p5 = scmp.ne.s32.totalorder %s43_s13, %s2793_s14  ;;  %p2799_p7 = scmp.lt.s32.totalorder %s2793_s14, %s2793_s14 }
  0x12   :  { %p2800_p8 = por %p2799_p7, %p2798_p6 }
  0x14   :  { %p2801_p9 = pnand %p2800_p8, %p2794_p5 }
  0x16   :  { %2804 = shalt.err (!%p2801_p9)
}
  0x17   :  { %s2813_s15 = smov 64   ;;  %s2814_s16 = smov 4  }
  0x18   :  { %48 = dma.hbm_to_vmem [thread:$0]  %s3408_s6, 3072, %s43_s13, [#allocation5], %s2813_s15, %s2813_s15, %s2814_s16  }
  0x19   :  { %2805 = dma.done.wait [#allocation3], 12288  }
  0x1a   :  { %2806 = vsyncadd [#allocation3], 4294955008 }
  0x1b   :  { %2807 = dma.done.wait [#allocation5], 3072  }
  0x1c   :  { %2808 = vsyncadd [#allocation5], 4294964224  ;;  %v2815_v0 = vmov 0   ;;  %v78_v1 = vld [vmem:[%s3403_s1 + $0x20] sm:$0x33]  ;;  %vm197_vm0 = vcmask 1041408  }
  0x1d   :  { %242 = vmatprep.mubr.bf16.mxu0 %v2815_v0  ;;  %355 = vmatprep.mubr.bf16.mxu1 %v2815_v0  ;;  %v79_v2 = vld [vmem:[%s3403_s1 + $0x28] sm:$0x33]  ;;  %v2207_v3 = vcombine.high %v78_v1, %v78_v1  ;;  %v2206_v5 = vcombine.low %v78_v1, %v78_v1  ;;  %v2599_v7 = vld [vmem:[%s3403_s1 + $0x4] ss:$16 sps:$4 sm:$0xff]   ;;  %v2603_v11 = vld [vmem:[%s3403_s1] ss:$16 sps:$4 sm:$0xff]  }
  0x1e   :  { %v2209_v4 = vcombine.high %v79_v2, %v79_v2  ;;  %v2208_v6 = vcombine.low %v79_v2, %v79_v2  ;;  %v2601_v8 = vld [vmem:[%s3403_s1 + $0xc] ss:$16 sps:$4 sm:$0xff]   ;;  %v2604_v12 = vld [vmem:[%s3403_s1 + $0x8] ss:$16 sps:$4 sm:$0xff]   ;;  %v2605_v13 = vld [vmem:[%s3402_s0] sm:$0xff]   ;;  %vm172_vm1 = vcmask 162816  }
  0x1f   :  { %2210 = vmatprep.subr.msk.bf16.mxu0 %vm197_vm0, %v2207_v3  ;;  %v199_v9 = vsel %vm197_vm0, %v2206_v5, 0  ;;  %v2613_v14 = vld [vmem:[#allocation2 + $0xa8] ss:$12 sps:$4 sm:$0xff]   ;;  %v2615_v15 = vld [vmem:[#allocation2 + $0xac] ss:$12 sps:$4 sm:$0xff]   ;;  %v2609_v47 = vld [vmem:[%s3402_s0 + $0x20] sm:$0xff]  }
  0x20   :  { %2219 = vmatprep.subr.msk.bf16.mxu1 %vm197_vm0, %v2209_v4  ;;  %v205_v10 = vsel %vm197_vm0, %v2208_v6, 0  ;;  %223 = vmatpush1.bf16.msra.mxu0 %v199_v9  ;;  %v2616_v16 = vld [vmem:[#allocation2 + $0x228] ss:$12 sps:$4 sm:$0xff]   ;;  %v2618_v17 = vld [vmem:[#allocation2 + $0x22c] ss:$12 sps:$4 sm:$0xff]  }
  0x21   :  { %336 = vmatpush1.bf16.msra.mxu1 %v205_v10  ;;  %224 = vmatprep.subr.bf16.mxu0 %v2599_v7  ;;  %v2606_v18 = vld [vmem:[%s3402_s0 + $0x8] sm:$0xff]   ;;  %v2621_v19 = vld [vmem:[#allocation2 + $0x94] ss:$12 sps:$4 sm:$0xff]   ;;  %v2619_v20 = vld [vmem:[#allocation2 + $0x90] ss:$12 sps:$4 sm:$0xff]  }
  0x22   :  { %337 = vmatprep.subr.bf16.mxu1 %v2601_v8  ;;  %v2624_v21 = vld [vmem:[#allocation2 + $0x214] ss:$12 sps:$4 sm:$0xff]   ;;  %v2622_v22 = vld [vmem:[#allocation2 + $0x210] ss:$12 sps:$4 sm:$0xff]   ;;  %v2625_v25 = vld [vmem:[#allocation2 + $0x78] ss:$12 sps:$4 sm:$0xff]  }
  0x23   :  { %v2627_v23 = vld [vmem:[#allocation2 + $0x7c] ss:$12 sps:$4 sm:$0xff]   ;;  %v2628_v26 = vld [vmem:[#allocation2 + $0x1f8] ss:$12 sps:$4 sm:$0xff]   ;;  %v2607_v29 = vld [vmem:[%s3402_s0 + $0x10] sm:$0xff]  }
  0x24   :  { %225 = vmatpush1.bf16.msra.mxu0 %v2603_v11  ;;  %v2630_v24 = vld [vmem:[#allocation2 + $0x1fc] ss:$12 sps:$4 sm:$0xff]   ;;  %v2633_v27 = vld [vmem:[#allocation2 + $0x64] ss:$12 sps:$4 sm:$0xff]   ;;  %v2631_v30 = vld [vmem:[#allocation2 + $0x60] ss:$12 sps:$4 sm:$0xff]  }
  0x25   :  { %338 = vmatpush1.bf16.msra.mxu1 %v2604_v12  ;;  %1275 = vmatprep.subr.bf16.mxu0 %v2615_v15  ;;  %v2636_v28 = vld [vmem:[#allocation2 + $0x1e4] ss:$12 sps:$4 sm:$0xff]   ;;  %v2634_v31 = vld [vmem:[#allocation2 + $0x1e0] ss:$12 sps:$4 sm:$0xff]   ;;  %v2637_v34 = vld [vmem:[#allocation2 + $0x48] ss:$12 sps:$4 sm:$0xff]  }
  0x26   :  { %1388 = vmatprep.subr.bf16.mxu1 %v2618_v17  ;;  %v2639_v32 = vld [vmem:[#allocation2 + $0x4c] ss:$12 sps:$4 sm:$0xff]   ;;  %v2640_v35 = vld [vmem:[#allocation2 + $0x1c8] ss:$12 sps:$4 sm:$0xff]   ;;  %v2643_v39 = vld [vmem:[#allocation2 + $0x30] ss:$12 sps:$4 sm:$0xff]  }
  0x27   :  { %2211 = vmatmul.mubr.msk.bf16.vlgmr.msra.gmra.mxu0 %vm172_vm1, %v2605_v13  ;;  %v2642_v33 = vld [vmem:[#allocation2 + $0x1cc] ss:$12 sps:$4 sm:$0xff]   ;;  %v2645_v36 = vld [vmem:[#allocation2 + $0x34] ss:$12 sps:$4 sm:$0xff]   ;;  %v2646_v40 = vld [vmem:[#allocation2 + $0x1b0] ss:$12 sps:$4 sm:$0xff]  }
  0x28   :  { %2220 = vmatmul.mubr.msk.bf16.vlgmr.msra.gmra.mxu1 %vm172_vm1, %v2605_v13  ;;  %252 = vmatprep.mubr.bf16.mxu0 %v2815_v0  ;;  %v2648_v37 = vld [vmem:[#allocation2 + $0x1b4] ss:$12 sps:$4 sm:$0xff]   ;;  %v2608_v38 = vld [vmem:[%s3402_s0 + $0x18] sm:$0xff]   ;;  %v2657_v45 = vld [vmem:[#allocation2 + $0x4] ss:$12 sps:$4 sm:$0xff]  }
  0x29   :  { %365 = vmatprep.mubr.bf16.mxu1 %v2815_v0  ;;  %1276 = vmatpush1.bf16.msra.mxu0 %v2613_v14  ;;  %v2651_v41 = vld [vmem:[#allocation2 + $0x1c] ss:$12 sps:$4 sm:$0xff]   ;;  %v2649_v43 = vld [vmem:[#allocation2 + $0x18] ss:$12 sps:$4 sm:$0xff]   ;;  %v2655_v48 = vld [vmem:[#allocation2] ss:$12 sps:$4 sm:$0xff]  }
  0x2a   :  { %1389 = vmatpush1.bf16.msra.mxu1 %v2616_v16  ;;  %1277 = vmatprep.subr.bf16.mxu0 %v2621_v19  ;;  %v2654_v42 = vld [vmem:[#allocation2 + $0x19c] ss:$12 sps:$4 sm:$0xff]   ;;  %v2652_v44 = vld [vmem:[#allocation2 + $0x198] ss:$12 sps:$4 sm:$0xff]   ;;  %v2658_v49 = vld [vmem:[#allocation2 + $0x180] ss:$12 sps:$4 sm:$0xff]  }
  0x2b   :  { %1390 = vmatprep.subr.bf16.mxu1 %v2624_v21  ;;  %v2660_v46 = vld [vmem:[#allocation2 + $0x184] ss:$12 sps:$4 sm:$0xff]   ;;  %v2663_v50 = vld [vmem:[#allocation2 + $0x16c] ss:$12 sps:$4 sm:$0xff]   ;;  %v2661_v52 = vld [vmem:[#allocation2 + $0x168] ss:$12 sps:$4 sm:$0xff]  }
  0x2c   :  { %v2666_v51 = vld [vmem:[#allocation2 + $0x2ec] ss:$12 sps:$4 sm:$0xff]   ;;  %v2664_v53 = vld [vmem:[#allocation2 + $0x2e8] ss:$12 sps:$4 sm:$0xff]   ;;  %v2667_v57 = vld [vmem:[#allocation2 + $0x150] ss:$12 sps:$4 sm:$0xff]  }
  0x2d   :  { %1278 = vmatpush1.bf16.msra.mxu0 %v2619_v20  ;;  %v2669_v54 = vld [vmem:[#allocation2 + $0x154] ss:$12 sps:$4 sm:$0xff]   ;;  %v2610_v55 = vld [vmem:[%s3402_s0 + $0x28] sm:$0xff]   ;;  %v2670_v58 = vld [vmem:[#allocation2 + $0x2d0] ss:$12 sps:$4 sm:$0xff]  }
  0x2e   :  { %1391 = vmatpush1.bf16.msra.mxu1 %v2622_v22  ;;  %1279 = vmatprep.subr.bf16.mxu0 %v2627_v23  ;;  %v2672_v56 = vld [vmem:[#allocation2 + $0x2d4] ss:$12 sps:$4 sm:$0xff]   ;;  %v2675_v59 = vld [vmem:[#allocation2 + $0x13c] ss:$12 sps:$4 sm:$0xff]   ;;  %v2673_v61 = vld [vmem:[#allocation2 + $0x138] ss:$12 sps:$4 sm:$0xff]   ;;  %v82_v23 = vlaneseq }
  0x2f   :  { %2212 = vmatmul.mubr.msk.bf16.gmra.mxu0 %vm172_vm1, %v2606_v18  ;;  %1392 = vmatprep.subr.bf16.mxu1 %v2630_v24  ;;  %v2678_v60 = vld [vmem:[#allocation2 + $0x2bc] ss:$12 sps:$4 sm:$0xff]   ;;  %v2676_v62 = vld [vmem:[#allocation2 + $0x2b8] ss:$12 sps:$4 sm:$0xff]   ;;  %v2611_v2 = vld [vmem:[%s3402_s0 + $0x30] sm:$0xff]  }
  0x30   :  { %2221 = vmatmul.mubr.msk.bf16.gmra.mxu1 %vm172_vm1, %v2606_v18  ;;  %262 = vmatprep.mubr.bf16.mxu0 %v2815_v0  ;;  %v2681_v63 = vld [vmem:[#allocation2 + $0x124] ss:$12 sps:$4 sm:$0xff]   ;;  %v2679_v3 = vld [vmem:[#allocation2 + $0x120] ss:$12 sps:$4 sm:$0xff]   ;;  %v2685_v6 = vld [vmem:[#allocation2 + $0x108] ss:$12 sps:$4 sm:$0xff]  }
  0x31   :  { %375 = vmatprep.mubr.bf16.mxu1 %v2815_v0  ;;  %1280 = vmatpush1.bf16.msra.mxu0 %v2625_v25  ;;  %v2684_v1 = vld [vmem:[#allocation2 + $0x2a4] ss:$12 sps:$4 sm:$0xff]   ;;  %v2682_v4 = vld [vmem:[#allocation2 + $0x2a0] ss:$12 sps:$4 sm:$0xff]   ;;  %v2612_v7 = vld [vmem:[%s3402_s0 + $0x38] sm:$0xff]   ;;  %v83_v24 = vshrl.u32 %v82_v23, 7 }
  0x32   :  { %1393 = vmatpush1.bf16.msra.mxu1 %v2628_v26  ;;  %1281 = vmatprep.subr.bf16.mxu0 %v2633_v27  ;;  %v2687_v5 = vld [vmem:[#allocation2 + $0x10c] ss:$12 sps:$4 sm:$0xff]   ;;  %v2688_v9 = vld [vmem:[#allocation2 + $0x288] ss:$12 sps:$4 sm:$0xff]   ;;  %v2691_v11 = vld [vmem:[#allocation2 + $0xf0] ss:$12 sps:$4 sm:$0xff]  }
  0x33   :  { %1394 = vmatprep.subr.bf16.mxu1 %v2636_v28  ;;  %v2690_v8 = vld [vmem:[#allocation2 + $0x28c] ss:$12 sps:$4 sm:$0xff]   ;;  %v2693_v10 = vld [vmem:[#allocation2 + $0xf4] ss:$12 sps:$4 sm:$0xff]   ;;  %v2699_v13 = vld [vmem:[#allocation2 + $0xdc] ss:$12 sps:$4 sm:$0xff]  }
  0x34   :  { %v2696_v12 = vld [vmem:[#allocation2 + $0x274] ss:$12 sps:$4 sm:$0xff]   ;;  %v2702_v14 = vld [vmem:[#allocation2 + $0x25c] ss:$12 sps:$4 sm:$0xff]   ;;  %v2697_v15 = vld [vmem:[#allocation2 + $0xd8] ss:$12 sps:$4 sm:$0xff]  }
  0x35   :  { %1282 = vmatpush1.bf16.msra.mxu0 %v2631_v30  ;;  %v2700_v16 = vld [vmem:[#allocation2 + $0x258] ss:$12 sps:$4 sm:$0xff]   ;;  %v2703_v19 = vld [vmem:[#allocation2 + $0xc0] ss:$12 sps:$4 sm:$0xff]   ;;  %v2709_v21 = vld [vmem:[#allocation2 + $0x170] ss:$12 sps:$4 sm:$0xff]  }
  0x36   :  { %1395 = vmatpush1.bf16.msra.mxu1 %v2634_v31  ;;  %1283 = vmatprep.subr.bf16.mxu0 %v2639_v32  ;;  %v2705_v17 = vld [vmem:[#allocation2 + $0xc4] ss:$12 sps:$4 sm:$0xff]   ;;  %v2706_v20 = vld [vmem:[#allocation2 + $0x240] ss:$12 sps:$4 sm:$0xff]   ;;  %v2941_v25 = vsub.s32 0, %v83_v24  ;;  %v2943_v26 = vsub.s32 1, %v83_v24 }
  0x37   :  { %2213 = vmatmul.mubr.msk.bf16.gmra.mxu0 %vm172_vm1, %v2607_v29  ;;  %1396 = vmatprep.subr.bf16.mxu1 %v2642_v33  ;;  %v2708_v18 = vld [vmem:[#allocation2 + $0x244] ss:$12 sps:$4 sm:$0xff]   ;;  %v80_v27 = vld [vmem:[%s3404_s2] sm:$0xf]  ;;  %v96_v28 = vsub.s32 3, %v83_v24 }
  0x38   :  { %2222 = vmatmul.mubr.msk.bf16.gmra.mxu1 %vm172_vm1, %v2607_v29  ;;  %272 = vmatprep.mubr.bf16.mxu0 %v2815_v0  ;;  %v2711_v22 = vld [vmem:[#allocation2 + $0x2f0] ss:$12 sps:$4 sm:$0xff]   ;;  %3415 = vst [vmem:[#allocation8_spill] sm:$0xff] %v2941_v25  ;;  %3416 = vst [vmem:[#allocation9_spill] sm:$0xff] %v2943_v26  ;;  %v2948_v29 = vsub.s32 2, %v83_v24  ;;  %v2951_v30 = vrot.slane %v80_v27, %v2941_v25  ;;  %v2954_v31 = vrot.slane %v80_v27, %v2943_v26 }
  0x39   :  { %385 = vmatprep.mubr.bf16.mxu1 %v2815_v0  ;;  %1284 = vmatpush1.bf16.msra.mxu0 %v2637_v34  ;;  %v436_v33 = vld [vmem:[%s3405_s3] sm:$0xf] }
  0x3a   :  { %1397 = vmatpush1.bf16.msra.mxu1 %v2640_v35  ;;  %1285 = vmatprep.subr.bf16.mxu0 %v2645_v36  ;;  %3417 = vst [vmem:[#allocation10_spill] sm:$0xff] %v2948_v29  ;;  %v2959_v35 = vrot.slane %v80_v27, %v96_v28  ;;  %v2962_v36 = vrot.slane %v80_v27, %v2948_v29  ;;  %v2710_v27 = vld [vmem:[#allocation2 + $0xb0] ss:$12 sps:$4 sm:$0xff]  }
  0x3b   :  { %1398 = vmatprep.subr.bf16.mxu1 %v2648_v37 }
  0x3d   :  { %1286 = vmatpush1.bf16.msra.mxu0 %v2643_v39 }
  0x3e   :  { %1399 = vmatpush1.bf16.msra.mxu1 %v2646_v40  ;;  %1287 = vmatprep.subr.bf16.mxu0 %v2651_v41  ;;  %v2966_v40 = vrot.slane %v436_v33, %v2941_v25 }
  0x3f   :  { %2214 = vmatmul.mubr.msk.bf16.gmra.mxu0 %vm172_vm1, %v2608_v38  ;;  %1400 = vmatprep.subr.bf16.mxu1 %v2654_v42  ;;  %v2970_v42 = vrot.slane %v436_v33, %v2943_v26 }
  0x40   :  { %2223 = vmatmul.mubr.msk.bf16.gmra.mxu1 %vm172_vm1, %v2608_v38  ;;  %282 = vmatprep.mubr.bf16.mxu0 %v2815_v0 }
  0x41   :  { %395 = vmatprep.mubr.bf16.mxu1 %v2815_v0  ;;  %1288 = vmatpush1.bf16.msra.mxu0 %v2649_v43 }
  0x42   :  { %1401 = vmatpush1.bf16.msra.mxu1 %v2652_v44  ;;  %1289 = vmatprep.subr.bf16.mxu0 %v2657_v45  ;;  %v2973_v44 = vrot.slane %v436_v33, %v96_v28 }
  0x43   :  { %1402 = vmatprep.subr.bf16.mxu1 %v2660_v46 }
  0x45   :  { %1290 = vmatpush1.bf16.msra.mxu0 %v2655_v48  ;;  %v2977_v48 = vrot.slane %v436_v33, %v2948_v29 }
  0x46   :  { %1403 = vmatpush1.bf16.msra.mxu1 %v2658_v49  ;;  %1291 = vmatprep.subr.bf16.mxu0 %v2663_v50 }
  0x47   :  { %2215 = vmatmul.mubr.msk.bf16.gmra.mxu0 %vm172_vm1, %v2609_v47  ;;  %1404 = vmatprep.subr.bf16.mxu1 %v2666_v51 }
  0x48   :  { %2224 = vmatmul.mubr.msk.bf16.gmra.mxu1 %vm172_vm1, %v2609_v47  ;;  %292 = vmatprep.mubr.bf16.mxu0 %v2815_v0 }
  0x49   :  { %405 = vmatprep.mubr.bf16.mxu1 %v2815_v0  ;;  %1292 = vmatpush2.bf16.msra.mxu0 %v2661_v52 }
  0x4a   :  { %1405 = vmatpush2.bf16.msra.mxu1 %v2664_v53  ;;  %1293 = vmatprep.subr.bf16.mxu0 %v2669_v54 }
  0x4b   :  { %1406 = vmatprep.subr.bf16.mxu1 %v2672_v56 }
  0x4d   :  { %1294 = vmatpush2.bf16.msra.mxu0 %v2667_v57 }
  0x4e   :  { %1407 = vmatpush2.bf16.msra.mxu1 %v2670_v58  ;;  %1295 = vmatprep.subr.bf16.mxu0 %v2675_v59 }
  0x4f   :  { %2216 = vmatmul.mubr.msk.bf16.gmra.mxu0 %vm172_vm1, %v2610_v55  ;;  %1408 = vmatprep.subr.bf16.mxu1 %v2678_v60 }
  0x50   :  { %2225 = vmatmul.mubr.msk.bf16.gmra.mxu1 %vm172_vm1, %v2610_v55  ;;  %302 = vmatprep.mubr.bf16.mxu0 %v2815_v0 }
  0x51   :  { %415 = vmatprep.mubr.bf16.mxu1 %v2815_v0  ;;  %1296 = vmatpush2.bf16.msra.mxu0 %v2673_v61 }
  0x52   :  { %1409 = vmatpush2.bf16.msra.mxu1 %v2676_v62  ;;  %1297 = vmatprep.subr.bf16.mxu0 %v2681_v63 }
  0x53   :  { %1410 = vmatprep.subr.bf16.mxu1 %v2684_v1 }
  0x55   :  { %1298 = vmatpush2.bf16.msra.mxu0 %v2679_v3 }
  0x56   :  { %1411 = vmatpush2.bf16.msra.mxu1 %v2682_v4  ;;  %1299 = vmatprep.subr.bf16.mxu0 %v2687_v5 }
  0x57   :  { %2217 = vmatmul.mubr.msk.bf16.gmra.mxu0 %vm172_vm1, %v2611_v2  ;;  %1412 = vmatprep.subr.bf16.mxu1 %v2690_v8 }
  0x58   :  { %2226 = vmatmul.mubr.msk.bf16.gmra.mxu1 %vm172_vm1, %v2611_v2  ;;  %312 = vmatprep.mubr.bf16.mxu0 %v2815_v0 }
  0x59   :  { %425 = vmatprep.mubr.bf16.mxu1 %v2815_v0  ;;  %1300 = vmatpush2.bf16.msra.mxu0 %v2685_v6  ;;  %v2694_v0 = vld [vmem:[#allocation2 + $0x270] ss:$12 sps:$4 sm:$0xff]  }
  0x5a   :  { %1413 = vmatpush2.bf16.msra.mxu1 %v2688_v9  ;;  %1301 = vmatprep.subr.bf16.mxu0 %v2693_v10 }
  0x5b   :  { %1414 = vmatprep.subr.bf16.mxu1 %v2696_v12 }
  0x5d   :  { %1302 = vmatpush2.bf16.msra.mxu0 %v2691_v11 }
  0x5e   :  { %1415 = vmatpush2.bf16.msra.mxu1 %v2694_v0  ;;  %1303 = vmatprep.subr.bf16.mxu0 %v2699_v13 }
  0x5f   :  { %2218 = vmatmul.mubr.msk.bf16.gmra.mxu0 %vm172_vm1, %v2612_v7  ;;  %1416 = vmatprep.subr.bf16.mxu1 %v2702_v14 }
  0x60   :  { %2227 = vmatmul.mubr.msk.bf16.gmra.mxu1 %vm172_vm1, %v2612_v7 }
  0x61   :  { %1304 = vmatpush2.bf16.msra.mxu0 %v2697_v15 }
  0x62   :  { %1417 = vmatpush2.bf16.msra.mxu1 %v2700_v16  ;;  %1305 = vmatprep.subr.bf16.mxu0 %v2705_v17 }
  0x63   :  { %1418 = vmatprep.subr.bf16.mxu1 %v2708_v18 }
  0x65   :  { %1306 = vmatpush2.bf16.msra.mxu0 %v2703_v19 }
  0x66   :  { %1419 = vmatpush2.bf16.msra.mxu1 %v2706_v20  ;;  %2348 = vmatprep.subr.bf16.mxu0 %v2709_v21 }
  0x67   :  { %2412 = vmatprep.subr.bf16.mxu1 %v2711_v22 }
  0xe7   :  { %v244_v32 = vpop.f32.mrf.mxu0 }
  0xe8   :  { %v357_v34 = vpop.f32.mrf.mxu1  ;;  %v245_v39 = vadd.f32 %v244_v32, %v2951_v30 }
  0xe9   :  { %v246_v37 = vpop.f32.mrf.mxu0  ;;  %v358_v47 = vadd.f32 %v357_v34, %v2962_v36 }
  0xea   :  { %v359_v38 = vpop.f32.mrf.mxu1  ;;  %v247_v41 = vadd.f32 %v246_v37, %v2954_v31  ;;  %v458_v53 = vmul.f32 %v2966_v40, %v245_v39  ;;  %v2712_v37 = vld [vmem:[#allocation2 + $0x230] ss:$12 sps:$4 sm:$0xff]  }
  0xeb   :  { %v360_v43 = vadd.f32 %v359_v38, %v2959_v35  ;;  %v248_v45 = vpop.f32.mrf.mxu0  ;;  %v460_v62 = vmul.f32 %v2977_v48, %v358_v47 }
  0xec   :  { %v361_v46 = vpop.f32.mrf.mxu1  ;;  %v249_v49 = vadd.f32 %v248_v45, %v2951_v30  ;;  %v459_v54 = vmul.f32 %v2970_v42, %v247_v41  ;;  %v522_v6 = vmax.f32 %v245_v39, %v458_v53 }
  0xed   :  { %v362_v50 = vadd.f32 %v361_v46, %v2962_v36  ;;  %v250_v51 = vpop.f32.mrf.mxu0  ;;  %v461_v57 = vmul.f32 %v2973_v44, %v360_v43  ;;  %v524_v15 = vmax.f32 %v358_v47, %v460_v62  ;;  %v2713_v46 = vld [vmem:[#allocation2 + $0x158] ss:$12 sps:$4 sm:$0xff]  }
  0xee   :  { %v363_v52 = vpop.f32.mrf.mxu1  ;;  %v251_v55 = vadd.f32 %v250_v51, %v2954_v31  ;;  %v462_v58 = vmul.f32 %v2966_v40, %v249_v49  ;;  %v523_v7 = vmax.f32 %v247_v41, %v459_v54  ;;  %v2715_v51 = vld [vmem:[#allocation2 + $0x2d8] ss:$12 sps:$4 sm:$0xff]  }
  0xef   :  { %v364_v56 = vadd.f32 %v363_v52, %v2959_v35  ;;  %v464_v59 = vmul.f32 %v2977_v48, %v362_v50  ;;  %v254_v60 = vpop.f32.mrf.mxu0  ;;  %v525_v10 = vmax.f32 %v360_v43, %v461_v57 }
  0xf0   :  { %v367_v61 = vpop.f32.mrf.mxu1  ;;  %v463_v63 = vmul.f32 %v2970_v42, %v251_v55  ;;  %v526_v2 = vmax.f32 %v249_v49, %v462_v58  ;;  %v2992_v3 = vadd.f32 %v254_v60, %v2951_v30 }
  0xf1   :  { %v465_v1 = vmul.f32 %v2973_v44, %v364_v56  ;;  %v256_v4 = vpop.f32.mrf.mxu0  ;;  %v528_v11 = vmax.f32 %v362_v50, %v464_v59  ;;  %v2997_v16 = vadd.f32 %v367_v61, %v2962_v36  ;;  %v2716_v61 = vld [vmem:[#allocation2 + $0x218] ss:$12 sps:$4 sm:$0xff]  }
  0xf2   :  { %v369_v5 = vpop.f32.mrf.mxu1  ;;  %v527_v8 = vmax.f32 %v251_v55, %v463_v63  ;;  %v257_v12 = vadd.f32 %v256_v4, %v2954_v31  ;;  %v3003_v19 = vpack.c.bf16 %v526_v2, %v522_v6  ;;  %v466_v20 = vmul.f32 %v2966_v40, %v2992_v3 }
  0xf3   :  { %v529_v9 = vmax.f32 %v364_v56, %v465_v1  ;;  %v370_v0 = vadd.f32 %v369_v5, %v2959_v35  ;;  %v258_v13 = vpop.f32.mrf.mxu0  ;;  %v3016_v38 = vpack.c.bf16 %v528_v11, %v524_v15  ;;  %v468_v47 = vmul.f32 %v2977_v48, %v2997_v16  ;;  %v2714_v56 = vld [vmem:[#allocation2 + $0x98] ss:$12 sps:$4 sm:$0xff]  }
  0xf4   :  { %v371_v14 = vpop.f32.mrf.mxu1  ;;  %v259_v17 = vadd.f32 %v258_v13, %v2951_v30  ;;  %v3007_v23 = vpack.c.bf16 %v527_v8, %v523_v7  ;;  %v467_v39 = vmul.f32 %v2970_v42, %v257_v12  ;;  %v530_v62 = vmax.f32 %v2992_v3, %v466_v20  ;;  %v2718_v20 = vld [vmem:[#allocation2 + $0x80] ss:$12 sps:$4 sm:$0xff]  }
  0xf5   :  { %v3001_v18 = vadd.f32 %v371_v14, %v2962_v36  ;;  %v260_v21 = vpop.f32.mrf.mxu0  ;;  %v3009_v24 = vpack.c.bf16 %v529_v9, %v525_v10  ;;  %v469_v41 = vmul.f32 %v2973_v44, %v370_v0  ;;  %v532_v6 = vmax.f32 %v2997_v16, %v468_v47  ;;  %v2717_v14 = vld [vmem:[#allocation2 + $0x140] ss:$12 sps:$4 sm:$0xff]  }
  0xf6   :  { %v373_v22 = vpop.f32.mrf.mxu1  ;;  %v470_v28 = vmul.f32 %v2966_v40, %v259_v17  ;;  %v261_v33 = vadd.f32 %v260_v21, %v2954_v31  ;;  %1307 = vmatprep.mubr.bf16.mxu0 %v3007_v23  ;;  %v531_v63 = vmax.f32 %v257_v12, %v467_v39 }
  0xf7   :  { %v472_v32 = vmul.f32 %v2977_v48, %v3001_v18  ;;  %v374_v34 = vadd.f32 %v373_v22, %v2959_v35  ;;  %1420 = vmatprep.mubr.bf16.mxu1 %v3009_v24  ;;  %v264_v43 = vpop.f32.mrf.mxu0  ;;  %1308 = vmatmul.mubr.bf16.vlgmr.msra.gmra.mxu0 %v3003_v19  ;;  %v533_v1 = vmax.f32 %v370_v0, %v469_v41  ;;  %v2720_v41 = vld [vmem:[#allocation2 + $0x200] ss:$12 sps:$4 sm:$0xff]  }
  0xf8   :  { %v377_v45 = vpop.f32.mrf.mxu1  ;;  %v471_v49 = vmul.f32 %v2970_v42, %v261_v33  ;;  %v534_v52 = vmax.f32 %v259_v17, %v470_v28  ;;  %v3028_v53 = vadd.f32 %v264_v43, %v2951_v30  ;;  %1421 = vmatmul.mubr.bf16.vlgmr.msra.gmra.mxu1 %v3016_v38  ;;  %2349 = vmatpush3.bf16.msra.mxu0 %v2710_v27 }
  0xf9   :  { %v473_v50 = vmul.f32 %v2973_v44, %v374_v34  ;;  %v266_v54 = vpop.f32.mrf.mxu0  ;;  %v536_v57 = vmax.f32 %v3001_v18, %v472_v32  ;;  %2413 = vmatpush3.bf16.msra.mxu1 %v2712_v37  ;;  %2350 = vmatprep.subr.bf16.mxu0 %v2713_v46  ;;  %v3041_v7 = vadd.f32 %v377_v45, %v2962_v36 }
  0xfa   :  { %v379_v55 = vpop.f32.mrf.mxu1  ;;  %v535_v58 = vmax.f32 %v261_v33, %v471_v49  ;;  %v3033_v60 = vadd.f32 %v266_v54, %v2954_v31  ;;  %2414 = vmatprep.subr.bf16.mxu1 %v2715_v51  ;;  %v474_v3 = vmul.f32 %v2966_v40, %v3028_v53  ;;  %v3053_v13 = vpack.c.bf16 %v534_v52, %v530_v62  ;;  %v2719_v33 = vld [vmem:[#allocation2 + $0x2c0] ss:$12 sps:$4 sm:$0xff]   ;;  %v2721_v49 = vld [vmem:[#allocation2 + $0x128] ss:$12 sps:$4 sm:$0xff]  }
  0xfb   :  { %v537_v59 = vmax.f32 %v374_v34, %v473_v50  ;;  %v3037_v2 = vadd.f32 %v379_v55, %v2959_v35  ;;  %v268_v4 = vpop.f32.mrf.mxu0  ;;  %v3060_v18 = vpack.c.bf16 %v536_v57, %v532_v6  ;;  %v476_v34 = vmul.f32 %v2977_v48, %v3041_v7  ;;  %v2722_v55 = vld [vmem:[#allocation2 + $0x68] ss:$12 sps:$4 sm:$0xff]  }
  0xfc   :  { %v381_v5 = vpop.f32.mrf.mxu1  ;;  %v269_v8 = vadd.f32 %v268_v4, %v2951_v30  ;;  %v3049_v12 = vpack.c.bf16 %v535_v58, %v531_v63  ;;  %2351 = vmatpush3.bf16.msra.mxu0 %v2714_v56  ;;  %v475_v15 = vmul.f32 %v2970_v42, %v3033_v60  ;;  %v538_v50 = vmax.f32 %v3028_v53, %v474_v3 }
  0xfd   :  { %v3045_v9 = vadd.f32 %v381_v5, %v2962_v36  ;;  %v270_v10 = vpop.f32.mrf.mxu0  ;;  %v3051_v0 = vpack.c.bf16 %v537_v59, %v533_v1  ;;  %2415 = vmatpush3.bf16.msra.mxu1 %v2716_v61  ;;  %v477_v21 = vmul.f32 %v2973_v44, %v3037_v2  ;;  %2352 = vmatprep.subr.bf16.mxu0 %v2717_v14 }
  0xfe   :  { %v383_v11 = vpop.f32.mrf.mxu1  ;;  %v478_v16 = vmul.f32 %v2966_v40, %v269_v8  ;;  %v271_v22 = vadd.f32 %v270_v10, %v2954_v31  ;;  %1317 = vmatprep.mubr.bf16.mxu0 %v3049_v12  ;;  %v539_v51 = vmax.f32 %v3033_v60, %v475_v15  ;;  %2416 = vmatprep.subr.bf16.mxu1 %v2719_v33  ;;  %v2724_v15 = vld [vmem:[#allocation2 + $0x1e8] ss:$12 sps:$4 sm:$0xff]  }
  0xff   :  { %v480_v17 = vmul.f32 %v2977_v48, %v3045_v9  ;;  %v384_v27 = vadd.f32 %v383_v11, %v2959_v35  ;;  %1430 = vmatprep.mubr.bf16.mxu1 %v3051_v0  ;;  %v274_v28 = vpop.f32.mrf.mxu0  ;;  %1318 = vmatmul.mubr.bf16.gmra.mxu0 %v3053_v13  ;;  %v541_v56 = vmax.f32 %v3037_v2, %v477_v21 }
 0x100   :  { %v387_v32 = vpop.f32.mrf.mxu1  ;;  %v542_v37 = vmax.f32 %v269_v8, %v478_v16  ;;  %v3071_v39 = vadd.f32 %v274_v28, %v2951_v30  ;;  %v479_v43 = vmul.f32 %v2970_v42, %v271_v22  ;;  %1431 = vmatmul.mubr.bf16.gmra.mxu1 %v3060_v18  ;;  %2353 = vmatpush3.bf16.msra.mxu0 %v2718_v20 }
 0x101   :  { %v481_v45 = vmul.f32 %v2973_v44, %v384_v27  ;;  %v276_v46 = vpop.f32.mrf.mxu0  ;;  %v544_v52 = vmax.f32 %v3045_v9, %v480_v17  ;;  %v540_v53 = vmax.f32 %v3041_v7, %v476_v34  ;;  %v3091_v63 = vadd.f32 %v387_v32, %v2962_v36  ;;  %2417 = vmatpush3.bf16.msra.mxu1 %v2720_v41  ;;  %v2723_v7 = vld [vmem:[#allocation2 + $0x2a8] ss:$12 sps:$4 sm:$0xff]   ;;  %v2726_v34 = vld [vmem:[#allocation2 + $0x50] ss:$12 sps:$4 sm:$0xff]  }
 0x102   :  { %v389_v47 = vpop.f32.mrf.mxu1  ;;  %v3081_v54 = vadd.f32 %v276_v46, %v2954_v31  ;;  %v543_v57 = vmax.f32 %v271_v22, %v479_v43  ;;  %v482_v60 = vmul.f32 %v2966_v40, %v3071_v39  ;;  %v3093_v1 = vpack.c.bf16 %v542_v37, %v538_v50  ;;  %2354 = vmatprep.subr.bf16.mxu0 %v2721_v49  ;;  %v2727_v46 = vld [vmem:[#allocation2 + $0x290] ss:$12 sps:$4 sm:$0xff]  }
 0x103   :  { %v545_v58 = vmax.f32 %v384_v27, %v481_v45  ;;  %v3085_v59 = vadd.f32 %v389_v47, %v2959_v35  ;;  %v278_v61 = vpop.f32.mrf.mxu0  ;;  %v3107_v14 = vpack.c.bf16 %v544_v52, %v540_v53  ;;  %v2725_v27 = vld [vmem:[#allocation2 + $0x110] ss:$12 sps:$4 sm:$0xff]   ;;  %v484_v28 = vmul.f32 %v2977_v48, %v3091_v63  ;;  %2418 = vmatprep.subr.bf16.mxu1 %v2723_v7 }
 0x104   :  { %v391_v62 = vpop.f32.mrf.mxu1  ;;  %v279_v2 = vadd.f32 %v278_v61, %v2951_v30  ;;  %v3099_v8 = vpack.c.bf16 %v543_v57, %v539_v51  ;;  %v483_v3 = vmul.f32 %v2970_v42, %v3081_v54  ;;  %2355 = vmatpush3.bf16.msra.mxu0 %v2722_v55  ;;  %v546_v47 = vmax.f32 %v3071_v39, %v482_v60  ;;  %v2728_v52 = vld [vmem:[#allocation2 + $0x1d0] ss:$12 sps:$4 sm:$0xff]  }
 0x105   :  { %v3097_v4 = vadd.f32 %v391_v62, %v2962_v36  ;;  %v280_v5 = vpop.f32.mrf.mxu0  ;;  %v3101_v9 = vpack.c.bf16 %v545_v58, %v541_v56  ;;  %v485_v16 = vmul.f32 %v2973_v44, %v3085_v59  ;;  %2419 = vmatpush3.bf16.msra.mxu1 %v2724_v15  ;;  %2356 = vmatprep.subr.bf16.mxu0 %v2725_v27 }
 0x106   :  { %v393_v6 = vpop.f32.mrf.mxu1  ;;  %v281_v10 = vadd.f32 %v280_v5, %v2954_v31  ;;  %v486_v17 = vmul.f32 %v2966_v40, %v279_v2  ;;  %1327 = vmatprep.mubr.bf16.mxu0 %v3099_v8  ;;  %v547_v49 = vmax.f32 %v3081_v54, %v483_v3  ;;  %v548_v39 = vmax.f32 %v3091_v63, %v484_v28  ;;  %v2729_v63 = vld [vmem:[#allocation2 + $0xf8] ss:$12 sps:$4 sm:$0xff]  }
 0x107   :  { %v394_v11 = vadd.f32 %v393_v6, %v2959_v35  ;;  %v488_v20 = vmul.f32 %v2977_v48, %v3097_v4  ;;  %1440 = vmatprep.mubr.bf16.mxu1 %v3101_v9  ;;  %v284_v21 = vpop.f32.mrf.mxu0  ;;  %1328 = vmatmul.mubr.bf16.gmra.mxu0 %v3093_v1  ;;  %v549_v55 = vmax.f32 %v3085_v59, %v485_v16  ;;  %v2730_v16 = vld [vmem:[#allocation2 + $0x38] ss:$12 sps:$4 sm:$0xff]  }
 0x108   :  { %v397_v22 = vpop.f32.mrf.mxu1  ;;  %v487_v32 = vmul.f32 %v2970_v42, %v281_v10  ;;  %v550_v37 = vmax.f32 %v279_v2, %v486_v17  ;;  %v3122_v41 = vadd.f32 %v284_v21, %v2951_v30  ;;  %1441 = vmatmul.mubr.bf16.gmra.mxu1 %v3107_v14  ;;  %2357 = vmatpush3.bf16.msra.mxu0 %v2726_v34  ;;  %v2731_v28 = vld [vmem:[#allocation2 + $0x278] ss:$12 sps:$4 sm:$0xff]  }
 0x109   :  { %v489_v33 = vmul.f32 %v2973_v44, %v394_v11  ;;  %v286_v43 = vpop.f32.mrf.mxu0  ;;  %v552_v56 = vmax.f32 %v3097_v4, %v488_v20  ;;  %v3137_v54 = vadd.f32 %v397_v22, %v2962_v36  ;;  %2420 = vmatprep.subr.bf16.mxu1 %v2727_v46  ;;  %2358 = vmatprep.subr.bf16.mxu0 %v2729_v63 }
 0x10a   :  { %v399_v45 = vpop.f32.mrf.mxu1  ;;  %v551_v50 = vmax.f32 %v281_v10, %v487_v32  ;;  %v3130_v57 = vadd.f32 %v286_v43, %v2954_v31  ;;  %v490_v60 = vmul.f32 %v2966_v40, %v3122_v41  ;;  %v3149_v7 = vpack.c.bf16 %v550_v37, %v546_v47  ;;  %2421 = vmatpush3.bf16.msra.mxu1 %v2728_v52  ;;  %v2732_v37 = vld [vmem:[#allocation2 + $0x1b8] ss:$12 sps:$4 sm:$0xff]  }
 0x10b   :  { %v553_v51 = vmax.f32 %v394_v11, %v489_v33  ;;  %v3133_v58 = vadd.f32 %v399_v45, %v2959_v35  ;;  %v288_v61 = vpop.f32.mrf.mxu0  ;;  %v3162_v27 = vpack.c.bf16 %v552_v56, %v548_v39  ;;  %v492_v32 = vmul.f32 %v2977_v48, %v3137_v54  ;;  %v2734_v56 = vld [vmem:[#allocation2 + $0x20] ss:$12 sps:$4 sm:$0xff]   ;;  %2422 = vmatprep.subr.bf16.mxu1 %v2731_v28 }
 0x10c   :  { %v401_v62 = vpop.f32.mrf.mxu1  ;;  %v289_v53 = vadd.f32 %v288_v61, %v2951_v30  ;;  %v3145_v5 = vpack.c.bf16 %v551_v50, %v547_v49  ;;  %v491_v17 = vmul.f32 %v2970_v42, %v3130_v57  ;;  %v2733_v49 = vld [vmem:[#allocation2 + $0xe0] ss:$12 sps:$4 sm:$0xff]   ;;  %2359 = vmatpush3.bf16.msra.mxu0 %v2730_v16  ;;  %v554_v61 = vmax.f32 %v3122_v41, %v490_v60 }
 0x10d   :  { %v3141_v59 = vadd.f32 %v401_v62, %v2962_v36  ;;  %v290_v2 = vpop.f32.mrf.mxu0  ;;  %v3147_v6 = vpack.c.bf16 %v553_v51, %v549_v55  ;;  %v493_v20 = vmul.f32 %v2973_v44, %v3133_v58  ;;  %2360 = vmatprep.subr.bf16.mxu0 %v2733_v49 }
 0x10e   :  { %v403_v4 = vpop.f32.mrf.mxu1  ;;  %v494_v3 = vmul.f32 %v2966_v40, %v289_v53  ;;  %v291_v11 = vadd.f32 %v290_v2, %v2954_v31  ;;  %1337 = vmatprep.mubr.bf16.mxu0 %v3145_v5  ;;  %v555_v62 = vmax.f32 %v3130_v57, %v491_v17  ;;  %2423 = vmatpush3.bf16.msra.mxu1 %v2732_v37 }
 0x10f   :  { %v496_v10 = vmul.f32 %v2977_v48, %v3141_v59  ;;  %v404_v15 = vadd.f32 %v403_v4, %v2959_v35  ;;  %1450 = vmatprep.mubr.bf16.mxu1 %v3147_v6  ;;  %v294_v21 = vpop.f32.mrf.mxu0  ;;  %1338 = vmatmul.mubr.bf16.gmra.mxu0 %v3149_v7  ;;  %v557_v39 = vmax.f32 %v3133_v58, %v493_v20 }
 0x110   :  { %v407_v22 = vpop.f32.mrf.mxu1  ;;  %v495_v33 = vmul.f32 %v2970_v42, %v291_v11  ;;  %v558_v43 = vmax.f32 %v289_v53, %v494_v3  ;;  %v3170_v45 = vadd.f32 %v294_v21, %v2951_v30  ;;  %1451 = vmatmul.mubr.bf16.gmra.mxu1 %v3162_v27  ;;  %2361 = vmatpush3.bf16.msra.mxu0 %v2734_v56 }
 0x111   :  { %v497_v34 = vmul.f32 %v2973_v44, %v404_v15  ;;  %v296_v46 = vpop.f32.mrf.mxu0  ;;  %v560_v50 = vmax.f32 %v3141_v59, %v496_v10  ;;  %v556_v59 = vmax.f32 %v3137_v54, %v492_v32  ;;  %v3185_v63 = vadd.f32 %v407_v22, %v2962_v36  ;;  %v2735_v54 = vld [vmem:[#allocation2 + $0x260] ss:$12 sps:$4 sm:$0xff]  }
 0x112   :  { %v409_v47 = vpop.f32.mrf.mxu1  ;;  %v559_v51 = vmax.f32 %v291_v11, %v495_v33  ;;  %v3175_v55 = vadd.f32 %v296_v46, %v2954_v31  ;;  %v498_v41 = vmul.f32 %v2966_v40, %v3170_v45  ;;  %v2736_v22 = vld [vmem:[#allocation2 + $0x1a0] ss:$12 sps:$4 sm:$0xff]   ;;  %2424 = vmatprep.subr.bf16.mxu1 %v2735_v54 }
 0x113   :  { %v561_v52 = vmax.f32 %v404_v15, %v497_v34  ;;  %v3181_v53 = vadd.f32 %v409_v47, %v2959_v35  ;;  %v298_v2 = vpop.f32.mrf.mxu0  ;;  %v3197_v15 = vpack.c.bf16 %v558_v43, %v554_v61  ;;  %v3204_v21 = vpack.c.bf16 %v560_v50, %v556_v59  ;;  %v2737_v43 = vld [vmem:[#allocation2 + $0xc8] ss:$12 sps:$4 sm:$0xff]   ;;  %2425 = vmatpush3.bf16.msra.mxu1 %v2736_v22 }
 0x114   :  { %v411_v4 = vpop.f32.mrf.mxu1  ;;  %v299_v3 = vadd.f32 %v298_v2, %v2951_v30  ;;  %v3193_v60 = vpack.c.bf16 %v559_v51, %v555_v62  ;;  %v499_v16 = vmul.f32 %v2970_v42, %v3175_v55  ;;  %v500_v46 = vmul.f32 %v2977_v48, %v3185_v63  ;;  %v2738_v51 = vld [vmem:[#allocation2 + $0x8] ss:$12 sps:$4 sm:$0xff]   ;;  %2362 = vmatprep.subr.bf16.mxu0 %v2737_v43 }
 0x115   :  { %v3189_v10 = vadd.f32 %v411_v4, %v2962_v36  ;;  %v300_v57 = vpop.f32.mrf.mxu0  ;;  %v3195_v11 = vpack.c.bf16 %v561_v52, %v557_v39  ;;  %v501_v28 = vmul.f32 %v2973_v44, %v3181_v53  ;;  %v2739_v39 = vld [vmem:[#allocation2 + $0x248] ss:$12 sps:$4 sm:$0xff]   ;;  %v562_v2 = vmax.f32 %v3170_v45, %v498_v41  ;;  %2363 = vmatpush3.bf16.msra.mxu0 %v2738_v51 }
 0x116   :  { %v413_v58 = vpop.f32.mrf.mxu1  ;;  %v502_v17 = vmul.f32 %v2966_v40, %v299_v3  ;;  %v301_v32 = vadd.f32 %v300_v57, %v2954_v31  ;;  %1347 = vmatprep.mubr.bf16.mxu0 %v3193_v60  ;;  %v563_v4 = vmax.f32 %v3175_v55, %v499_v16  ;;  %v2740_v57 = vld [vmem:[#allocation2 + $0x188] ss:$12 sps:$4 sm:$0xff]   ;;  %v564_v54 = vmax.f32 %v3185_v63, %v500_v46  ;;  %v2741_v63 = vld [vmem:[#allocation4 + $0x78] sm:$0xff]  }
 0x117   :  { %v504_v20 = vmul.f32 %v2977_v48, %v3189_v10  ;;  %v414_v33 = vadd.f32 %v413_v58, %v2959_v35  ;;  %1460 = vmatprep.mubr.bf16.mxu1 %v3195_v11  ;;  %v304_v34 = vpop.f32.mrf.mxu0  ;;  %1348 = vmatmul.mubr.bf16.gmra.mxu0 %v3197_v15  ;;  %v565_v58 = vmax.f32 %v3181_v53, %v501_v28 }
 0x118   :  { %v417_v37 = vpop.f32.mrf.mxu1  ;;  %v566_v47 = vmax.f32 %v299_v3, %v502_v17  ;;  %v3215_v49 = vadd.f32 %v304_v34, %v2951_v30  ;;  %v503_v52 = vmul.f32 %v2970_v42, %v301_v32  ;;  %1461 = vmatmul.mubr.bf16.gmra.mxu1 %v3204_v21  ;;  %2426 = vmatprep.subr.bf16.mxu1 %v2739_v39 }
 0x119   :  { %v3218_v50 = vadd.f32 %v417_v37, %v2962_v36  ;;  %v505_v56 = vmul.f32 %v2973_v44, %v414_v33  ;;  %v306_v61 = vpop.f32.mrf.mxu0  ;;  %v568_v59 = vmax.f32 %v3189_v10, %v504_v20  ;;  %2427 = vmatpush3.bf16.msra.mxu1 %v2740_v57  ;;  %2476 = vmatprep.subr.bf16.mxu0 %v2741_v63 }
 0x11a   :  { %v419_v62 = vpop.f32.mrf.mxu1  ;;  %v307_v3 = vadd.f32 %v306_v61, %v2954_v31  ;;  %v567_v17 = vmax.f32 %v301_v32, %v503_v52  ;;  %v506_v45 = vmul.f32 %v2966_v40, %v3215_v49  ;;  %v3235_v10 = vpack.c.bf16 %v566_v47, %v562_v2 }
 0x11b   :  { %v569_v34 = vmax.f32 %v414_v33, %v505_v56  ;;  %v420_v37 = vadd.f32 %v419_v62, %v2959_v35  ;;  %v308_v29 = vpop.f32.mrf.mxu0  ;;  %v508_v55 = vmul.f32 %v2977_v48, %v3218_v50  ;;  %v3246_v46 = vpack.c.bf16 %v568_v59, %v564_v54 }
 0x11c   :  { %v421_v25 = vpop.f32.mrf.mxu1  ;;  %3418 = vst [vmem:[#allocation11_spill] sm:$0xff] %v3235_v10  ;;  %v309_v53 = vadd.f32 %v308_v29, %v2951_v30  ;;  %v3239_v22 = vpack.c.bf16 %v567_v17, %v563_v4  ;;  %v507_v32 = vmul.f32 %v2970_v42, %v307_v3  ;;  %v570_v62 = vmax.f32 %v3215_v49, %v506_v45 }
 0x11d   :  { %v422_v41 = vadd.f32 %v421_v25, %v2962_v36  ;;  %v310_v16 = vpop.f32.mrf.mxu0  ;;  %v3241_v28 = vpack.c.bf16 %v569_v34, %v565_v58  ;;  %v509_v29 = vmul.f32 %v2973_v44, %v420_v37  ;;  %v572_v59 = vmax.f32 %v3218_v50, %v508_v55 }
 0x11e   :  { %v423_v20 = vpop.f32.mrf.mxu1  ;;  %v311_v33 = vadd.f32 %v310_v16, %v2954_v31  ;;  %v510_v25 = vmul.f32 %v2966_v40, %v309_v53  ;;  %1357 = vmatprep.mubr.bf16.mxu0 %v3239_v22  ;;  %v571_v57 = vmax.f32 %v307_v3, %v507_v32 }
 0x11f   :  { %v424_v43 = vadd.f32 %v423_v20, %v2959_v35  ;;  %v512_v47 = vmul.f32 %v2977_v48, %v422_v41  ;;  %1470 = vmatprep.mubr.bf16.mxu1 %v3241_v28  ;;  %v314_v51 = vpop.f32.mrf.mxu0  ;;  %1358 = vmatmul.mubr.bf16.gmra.mxu0 %v3235_v10  ;;  %v573_v34 = vmax.f32 %v420_v37, %v509_v29 }
 0x120   :  { %v427_v52 = vpop.f32.mrf.mxu1  ;;  %v511_v56 = vmul.f32 %v2970_v42, %v311_v33  ;;  %v574_v39 = vmax.f32 %v309_v53, %v510_v25  ;;  %1471 = vmatmul.mubr.bf16.gmra.mxu1 %v3246_v46  ;;  %v315_v49 = vadd.f32 %v314_v51, %v2951_v30 }
 0x121   :  { %v513_v61 = vmul.f32 %v2973_v44, %v424_v43  ;;  %v316_v2 = vpop.f32.mrf.mxu0  ;;  %v576_v54 = vmax.f32 %v422_v41, %v512_v47  ;;  %v428_v45 = vadd.f32 %v427_v52, %v2962_v36 }
 0x122   :  { %v429_v4 = vpop.f32.mrf.mxu1  ;;  %v575_v58 = vmax.f32 %v311_v33, %v511_v56  ;;  %v317_v16 = vadd.f32 %v316_v2, %v2954_v31  ;;  %v3270_v32 = vpack.c.bf16 %v574_v39, %v570_v62 }
 0x123   :  { %v577_v17 = vmax.f32 %v424_v43, %v513_v61  ;;  %v430_v20 = vadd.f32 %v429_v4, %v2959_v35  ;;  %v318_v26 = vpop.f32.mrf.mxu0  ;;  %v2742_v4 = vld [vmem:[#allocation4 + $0x38] sm:$0xff]  }
 0x124   :  { %v431_v10 = vpop.f32.mrf.mxu1  ;;  %v319_v53 = vadd.f32 %v318_v26, %v2951_v30  ;;  %v515_v50 = vmul.f32 %v2970_v42, %v317_v16  ;;  %v3266_v37 = vpack.c.bf16 %v575_v58, %v571_v57  ;;  %v2744_v57 = vld [vmem:[#allocation4 + $0x30] sm:$0xff]   ;;  %v2745_v58 = vld [vmem:[#allocation4 + $0x68] sm:$0xff]  }
 0x125   :  { %v432_v63 = vadd.f32 %v431_v10, %v2962_v36  ;;  %v320_v3 = vpop.f32.mrf.mxu0  ;;  %v3268_v41 = vpack.c.bf16 %v577_v17, %v573_v34  ;;  %v517_v33 = vmul.f32 %v2973_v44, %v430_v20  ;;  %v3279_v36 = vpack.c.bf16 %v576_v54, %v572_v59  ;;  %v2743_v59 = vld [vmem:[#allocation4 + $0x70] sm:$0xff]   ;;  %v2746_v17 = vld [vmem:[#allocation4 + $0x28] sm:$0xff]  }
 0x126   :  { %v433_v55 = vpop.f32.mrf.mxu1  ;;  %v518_v43 = vmul.f32 %v2966_v40, %v319_v53  ;;  %v321_v29 = vadd.f32 %v320_v3, %v2954_v31  ;;  %1367 = vmatprep.mubr.bf16.mxu0 %v3266_v37  ;;  %v514_v10 = vmul.f32 %v2966_v40, %v315_v49  ;;  %v516_v31 = vmul.f32 %v2977_v48, %v428_v45 }
 0x127   :  { %v434_v26 = vadd.f32 %v433_v55, %v2959_v35  ;;  %v520_v30 = vmul.f32 %v2977_v48, %v432_v63  ;;  %1480 = vmatprep.mubr.bf16.mxu1 %v3268_v41  ;;  %1368 = vmatmul.mubr.bf16.gmra.mxu0 %v3270_v32  ;;  %v579_v51 = vmax.f32 %v317_v16, %v515_v50 }
 0x128   :  { %v519_v25 = vmul.f32 %v2970_v42, %v321_v29  ;;  %1481 = vmatmul.mubr.bf16.gmra.mxu1 %v3279_v36  ;;  %v581_v35 = vmax.f32 %v430_v20, %v517_v33  ;;  %v582_v52 = vmax.f32 %v319_v53, %v518_v43  ;;  %v578_v39 = vmax.f32 %v315_v49, %v514_v10 }
 0x129   :  { %v521_v47 = vmul.f32 %v2973_v44, %v434_v26  ;;  %v584_v62 = vmax.f32 %v432_v63, %v520_v30  ;;  %v580_v42 = vmax.f32 %v428_v45, %v516_v31 }
 0x12a   :  { %v583_v56 = vmax.f32 %v321_v29, %v519_v25  ;;  %v3293_v44 = vpack.c.bf16 %v582_v52, %v578_v39 }
 0x12b   :  { %v585_v61 = vmax.f32 %v434_v26, %v521_v47  ;;  %v3295_v48 = vpack.c.bf16 %v584_v62, %v580_v42 }
 0x12c   :  { %v3287_v2 = vpack.c.bf16 %v583_v56, %v579_v51 }
 0x12d   :  { %v3289_v40 = vpack.c.bf16 %v585_v61, %v581_v35 }
 0x12e   :  { %1377 = vmatprep.mubr.bf16.mxu0 %v3287_v2 }
 0x12f   :  { %1490 = vmatprep.mubr.bf16.mxu1 %v3289_v40  ;;  %1378 = vmatmul.mubr.bf16.gmra.mxu0 %v3293_v44 }
 0x130   :  { %1491 = vmatmul.mubr.bf16.gmra.mxu1 %v3295_v48  ;;  %1533 = vmatprep.mubr.bf16.mxu0 %v3007_v23  ;;  %v2747_v23 = vld [vmem:[#allocation4 + $0x60] sm:$0xff]  }
 0x131   :  { %1630 = vmatprep.mubr.bf16.mxu1 %v3009_v24  ;;  %v2749_v24 = vld [vmem:[#allocation4 + $0x58] sm:$0xff]  }
 0x137   :  { %1534 = vmatmul.mubr.bf16.vlgmr.msra.gmra.mxu0 %v3003_v19  ;;  %v2748_v19 = vld [vmem:[#allocation4 + $0x20] sm:$0xff]  }
 0x138   :  { %1631 = vmatmul.mubr.bf16.vlgmr.msra.gmra.mxu1 %v3016_v38  ;;  %1541 = vmatprep.mubr.bf16.mxu0 %v3049_v12  ;;  %v2750_v38 = vld [vmem:[#allocation4 + $0x18] sm:$0xff]   ;;  %v2751_v12 = vld [vmem:[#allocation4 + $0x50] sm:$0xff]  }
 0x139   :  { %1638 = vmatprep.mubr.bf16.mxu1 %v3051_v0  ;;  %2477 = vmatpush3.bf16.msra.mxu0 %v2742_v4  ;;  %v2752_v0 = vld [vmem:[#allocation4 + $0x10] sm:$0xff]  }
 0x13a   :  { %2478 = vmatprep.subr.bf16.mxu0 %v2743_v59 }
 0x13d   :  { %2479 = vmatpush3.bf16.msra.mxu0 %v2744_v57 }
 0x13e   :  { %2480 = vmatprep.subr.bf16.mxu0 %v2745_v58 }
 0x13f   :  { %1542 = vmatmul.mubr.bf16.gmra.mxu0 %v3053_v13  ;;  %v2753_v13 = vld [vmem:[#allocation4 + $0x48] sm:$0xff]  }
 0x140   :  { %1639 = vmatmul.mubr.bf16.gmra.mxu1 %v3060_v18  ;;  %1549 = vmatprep.mubr.bf16.mxu0 %v3099_v8  ;;  %v2754_v18 = vld [vmem:[#allocation4 + $0x8] sm:$0xff]   ;;  %v2755_v8 = vld [vmem:[#allocation4 + $0x40] sm:$0xff]  }
 0x141   :  { %1646 = vmatprep.mubr.bf16.mxu1 %v3101_v9  ;;  %2481 = vmatpush3.bf16.msra.mxu0 %v2746_v17  ;;  %v2757_v9 = vld [vmem:[#allocation4 + $0xb8] sm:$0xff]  }
 0x142   :  { %2482 = vmatprep.subr.bf16.mxu0 %v2747_v23  ;;  %2556 = vmatprep.subr.bf16.mxu1 %v2757_v9 }
 0x143   :  { %2557 = vmatpush3.bf16.msra.mxu1 %v2757_v9 }
 0x145   :  { %2483 = vmatpush3.bf16.msra.mxu0 %v2748_v19 }
 0x146   :  { %2484 = vmatprep.subr.bf16.mxu0 %v2749_v24 }
 0x147   :  { %1550 = vmatmul.mubr.bf16.gmra.mxu0 %v3093_v1  ;;  %v2756_v1 = vld [vmem:[#allocation4] sm:$0xff]  }
 0x148   :  { %1647 = vmatmul.mubr.bf16.gmra.mxu1 %v3107_v14  ;;  %1557 = vmatprep.mubr.bf16.mxu0 %v3145_v5  ;;  %v2758_v14 = vld [vmem:[#allocation4 + $0xb0] sm:$0xff]   ;;  %v3419_v5 = vld [vmem:[#allocation11_spill] sm:$0xff] }
 0x149   :  { %1654 = vmatprep.mubr.bf16.mxu1 %v3147_v6  ;;  %2485 = vmatpush3.bf16.msra.mxu0 %v2750_v38  ;;  %v2759_v6 = vld [vmem:[#allocation4 + $0xa8] sm:$0xff]  }
 0x14a   :  { %2486 = vmatprep.subr.bf16.mxu0 %v2751_v12  ;;  %2558 = vmatprep.subr.bf16.mxu1 %v2758_v14 }
 0x14b   :  { %2559 = vmatpush3.bf16.msra.mxu1 %v2758_v14 }
 0x14c   :  { %2560 = vmatprep.subr.bf16.mxu1 %v2759_v6 }
 0x14d   :  { %2487 = vmatpush3.bf16.msra.mxu0 %v2752_v0 }
 0x14e   :  { %2488 = vmatprep.subr.bf16.mxu0 %v2753_v13 }
 0x14f   :  { %1558 = vmatmul.mubr.bf16.gmra.mxu0 %v3149_v7  ;;  %2561 = vmatpush3.bf16.msra.mxu1 %v2759_v6  ;;  %v2760_v7 = vld [vmem:[#allocation4 + $0xa0] sm:$0xff]  }
 0x150   :  { %1655 = vmatmul.mubr.bf16.gmra.mxu1 %v3162_v27  ;;  %1565 = vmatprep.mubr.bf16.mxu0 %v3193_v60  ;;  %v2761_v27 = vld [vmem:[#allocation4 + $0x98] sm:$0xff]   ;;  %v2762_v60 = vld [vmem:[#allocation4 + $0x90] sm:$0xff]  }
 0x151   :  { %1662 = vmatprep.mubr.bf16.mxu1 %v3195_v11  ;;  %2489 = vmatpush3.bf16.msra.mxu0 %v2754_v18  ;;  %v2763_v11 = vld [vmem:[#allocation4 + $0x88] sm:$0xff]  }
 0x152   :  { %2490 = vmatprep.subr.bf16.mxu0 %v2755_v8  ;;  %2562 = vmatprep.subr.bf16.mxu1 %v2760_v7 }
 0x153   :  { %2563 = vmatpush3.bf16.msra.mxu1 %v2760_v7 }
 0x154   :  { %2564 = vmatprep.subr.bf16.mxu1 %v2761_v27 }
 0x155   :  { %2491 = vmatpush3.bf16.msra.mxu0 %v2756_v1 }
 0x157   :  { %1566 = vmatmul.mubr.bf16.gmra.mxu0 %v3197_v15  ;;  %2565 = vmatpush3.bf16.msra.mxu1 %v2761_v27  ;;  %v2764_v15 = vld [vmem:[#allocation4 + $0x80] sm:$0xff]  }
 0x158   :  { %1663 = vmatmul.mubr.bf16.gmra.mxu1 %v3204_v21  ;;  %1573 = vmatprep.mubr.bf16.mxu0 %v3239_v22  ;;  %v3334_v21 = vld [vmem:[%s3407_s5] sm:$0x7]  ;;  %v3420_v22 = vld [vmem:[#allocation9_spill] sm:$0xff] }
 0x159   :  { %1670 = vmatprep.mubr.bf16.mxu1 %v3241_v28  ;;  %2566 = vmatprep.subr.bf16.mxu1 %v2762_v60  ;;  %v3338_v28 = vrot.slane %v3334_v21, %v3420_v22 }
 0x15b   :  { %2567 = vmatpush3.bf16.msra.mxu1 %v2762_v60 }
 0x15c   :  { %2568 = vmatprep.subr.bf16.mxu1 %v2763_v11 }
 0x15f   :  { %1574 = vmatmul.mubr.bf16.gmra.mxu0 %v3419_v5  ;;  %2569 = vmatpush3.bf16.msra.mxu1 %v2763_v11 }
 0x160   :  { %1671 = vmatmul.mubr.bf16.gmra.mxu1 %v3246_v46  ;;  %1581 = vmatprep.mubr.bf16.mxu0 %v3266_v37  ;;  %v3421_v46 = vld [vmem:[#allocation8_spill] sm:$0xff] }
 0x161   :  { %1678 = vmatprep.mubr.bf16.mxu1 %v3268_v41  ;;  %2570 = vmatprep.subr.bf16.mxu1 %v2764_v15  ;;  %v3342_v34 = vrot.slane %v3334_v21, %v3421_v46 }
 0x163   :  { %2571 = vmatpush3.bf16.msra.mxu1 %v2764_v15 }
 0x167   :  { %1582 = vmatmul.mubr.bf16.gmra.mxu0 %v3270_v32 }
 0x168   :  { %1679 = vmatmul.mubr.bf16.gmra.mxu1 %v3279_v36  ;;  %1589 = vmatprep.mubr.bf16.mxu0 %v3287_v2 }
 0x169   :  { %1686 = vmatprep.mubr.bf16.mxu1 %v3289_v40 }
 0x16f   :  { %1590 = vmatmul.mubr.bf16.gmra.mxu0 %v3293_v44 }
 0x170   :  { %1687 = vmatmul.mubr.bf16.gmra.mxu1 %v3295_v48 }
 0x1b7   :  { %v1309_v54 = vpop.f32.mrf.mxu0 }
 0x1b8   :  { %v1422_v16 = vpop.f32.mrf.mxu1  ;;  %v1310_v53 = vadd.f32 %v1309_v54, %v3342_v34 }
 0x1b9   :  { %v1311_v20 = vpop.f32.mrf.mxu0 }
 0x1ba   :  { %v1312_v49 = vadd.f32 %v1311_v20, %v3338_v28  ;;  %v1424_v45 = vpop.f32.mrf.mxu1  ;;  %v1423_v43 = vadd.f32 %v1422_v16, %v1310_v53 }
 0x1bb   :  { %v1313_v63 = vpop.f32.mrf.mxu0 }
 0x1bc   :  { %v1314_v50 = vadd.f32 %v1313_v63, %v3342_v34  ;;  %v1426_v3 = vpop.f32.mrf.mxu1  ;;  %v1425_v37 = vadd.f32 %v1424_v45, %v1312_v49  ;;  %v1695_v35 = vmax.f32 %v1423_v43, 0.0 }
 0x1bd   :  { %v1315_v55 = vpop.f32.mrf.mxu0 }
 0x1be   :  { %v1427_v41 = vadd.f32 %v1426_v3, %v1314_v50  ;;  %v1316_v32 = vadd.f32 %v1315_v55, %v3338_v28  ;;  %v1428_v33 = vpop.f32.mrf.mxu1  ;;  %v1696_v25 = vmax.f32 %v1425_v37, 0.0 }
 0x1bf   :  { %v1319_v29 = vpop.f32.mrf.mxu0 }
 0x1c0   :  { %v1429_v26 = vadd.f32 %v1428_v33, %v1316_v32  ;;  %v1432_v30 = vpop.f32.mrf.mxu1  ;;  %v1698_v36 = vmax.f32 %v1427_v41, 0.0  ;;  %v1320_v52 = vadd.f32 %v1319_v29, %v3342_v34 }
 0x1c1   :  { %v1321_v10 = vpop.f32.mrf.mxu0 }
 0x1c2   :  { %v1699_v47 = vmax.f32 %v1429_v26, 0.0  ;;  %v1322_v31 = vadd.f32 %v1321_v10, %v3338_v28  ;;  %v1434_v51 = vpop.f32.mrf.mxu1  ;;  %v1743_v2 = vpack.c.bf16 %v1698_v36, %v1695_v35  ;;  %v1433_v59 = vadd.f32 %v1432_v30, %v1320_v52 }
 0x1c3   :  { %v1323_v56 = vpop.f32.mrf.mxu0 }
 0x1c4   :  { %v1744_v61 = vpack.c.bf16 %v1699_v47, %v1696_v25  ;;  %v1324_v62 = vadd.f32 %v1323_v56, %v3342_v34  ;;  %v1436_v39 = vpop.f32.mrf.mxu1  ;;  %v1435_v42 = vadd.f32 %v1434_v51, %v1322_v31  ;;  %v1701_v13 = vmax.f32 %v1433_v59, 0.0 }
 0x1c5   :  { %v1325_v40 = vpop.f32.mrf.mxu0 }
 0x1c6   :  { %v1437_v44 = vadd.f32 %v1436_v39, %v1324_v62  ;;  %v1326_v48 = vadd.f32 %v1325_v40, %v3338_v28  ;;  %v1438_v4 = vpop.f32.mrf.mxu1  ;;  %1991 = vmatprep.mubr.bf16.mxu0 %v1744_v61  ;;  %v1702_v24 = vmax.f32 %v1435_v42, 0.0 }
 0x1c7   :  { %v1329_v57 = vpop.f32.mrf.mxu0  ;;  %1992 = vmatmul.mubr.bf16.vlgmr.msra.gmra.mxu0 %v1743_v2 }
 0x1c8   :  { %v1439_v58 = vadd.f32 %v1438_v4, %v1326_v48  ;;  %v1442_v17 = vpop.f32.mrf.mxu1  ;;  %v1704_v23 = vmax.f32 %v1437_v44, 0.0  ;;  %v1330_v18 = vadd.f32 %v1329_v57, %v3342_v34 }
 0x1c9   :  { %v1331_v19 = vpop.f32.mrf.mxu0 }
 0x1ca   :  { %v1705_v38 = vmax.f32 %v1439_v58, 0.0  ;;  %v1332_v12 = vadd.f32 %v1331_v19, %v3338_v28  ;;  %v1444_v0 = vpop.f32.mrf.mxu1  ;;  %v1746_v5 = vpack.c.bf16 %v1704_v23, %v1701_v13  ;;  %v1443_v15 = vadd.f32 %v1442_v17, %v1330_v18 }
 0x1cb   :  { %v1333_v8 = vpop.f32.mrf.mxu0 }
 0x1cc   :  { %v1747_v1 = vpack.c.bf16 %v1705_v38, %v1702_v24  ;;  %v1334_v9 = vadd.f32 %v1333_v8, %v3342_v34  ;;  %v1446_v14 = vpop.f32.mrf.mxu1  ;;  %v1445_v7 = vadd.f32 %v1444_v0, %v1332_v12  ;;  %v1707_v50 = vmax.f32 %v1443_v15, 0.0 }
 0x1cd   :  { %v1335_v6 = vpop.f32.mrf.mxu0 }
 0x1ce   :  { %v1447_v27 = vadd.f32 %v1446_v14, %v1334_v9  ;;  %v1336_v60 = vadd.f32 %v1335_v6, %v3338_v28  ;;  %v1448_v11 = vpop.f32.mrf.mxu1  ;;  %1999 = vmatprep.mubr.bf16.mxu0 %v1747_v1  ;;  %v1708_v49 = vmax.f32 %v1445_v7, 0.0 }
 0x1cf   :  { %v1339_v22 = vpop.f32.mrf.mxu0  ;;  %2000 = vmatmul.mubr.bf16.gmra.mxu0 %v1746_v5 }
 0x1d0   :  { %v1449_v46 = vadd.f32 %v1448_v11, %v1336_v60  ;;  %v1452_v54 = vpop.f32.mrf.mxu1  ;;  %v1710_v16 = vmax.f32 %v1447_v27, 0.0  ;;  %v1340_v3 = vadd.f32 %v1339_v22, %v3342_v34 }
 0x1d1   :  { %v1341_v20 = vpop.f32.mrf.mxu0 }
 0x1d2   :  { %v1711_v45 = vmax.f32 %v1449_v46, 0.0  ;;  %v1342_v53 = vadd.f32 %v1341_v20, %v3338_v28  ;;  %v1454_v63 = vpop.f32.mrf.mxu1  ;;  %v1749_v33 = vpack.c.bf16 %v1710_v16, %v1707_v50  ;;  %v1453_v10 = vadd.f32 %v1452_v54, %v1340_v3 }
 0x1d3   :  { %v1343_v55 = vpop.f32.mrf.mxu0 }
 0x1d4   :  { %v1750_v37 = vpack.c.bf16 %v1711_v45, %v1708_v49  ;;  %v1344_v41 = vadd.f32 %v1343_v55, %v3342_v34  ;;  %v1456_v32 = vpop.f32.mrf.mxu1  ;;  %v1455_v29 = vadd.f32 %v1454_v63, %v1342_v53  ;;  %v1713_v39 = vmax.f32 %v1453_v10, 0.0 }
 0x1d5   :  { %v1345_v43 = vpop.f32.mrf.mxu0 }
 0x1d6   :  { %v1457_v26 = vadd.f32 %v1456_v32, %v1344_v41  ;;  %v1346_v30 = vadd.f32 %v1345_v43, %v3338_v28  ;;  %v1458_v36 = vpop.f32.mrf.mxu1  ;;  %2007 = vmatprep.mubr.bf16.mxu0 %v1750_v37  ;;  %v1714_v52 = vmax.f32 %v1455_v29, 0.0 }
 0x1d7   :  { %v1349_v25 = vpop.f32.mrf.mxu0  ;;  %2008 = vmatmul.mubr.bf16.gmra.mxu0 %v1749_v33 }
 0x1d8   :  { %v1459_v47 = vadd.f32 %v1458_v36, %v1346_v30  ;;  %v1462_v31 = vpop.f32.mrf.mxu1  ;;  %v1716_v51 = vmax.f32 %v1457_v26, 0.0  ;;  %v1350_v2 = vadd.f32 %v1349_v25, %v3342_v34 }
 0x1d9   :  { %v1351_v35 = vpop.f32.mrf.mxu0 }
 0x1da   :  { %v1717_v56 = vmax.f32 %v1459_v47, 0.0  ;;  %v1352_v61 = vadd.f32 %v1351_v35, %v3338_v28  ;;  %v1464_v62 = vpop.f32.mrf.mxu1  ;;  %v1752_v4 = vpack.c.bf16 %v1716_v51, %v1713_v39  ;;  %v1463_v19 = vadd.f32 %v1462_v31, %v1350_v2 }
 0x1db   :  { %v1353_v40 = vpop.f32.mrf.mxu0 }
 0x1dc   :  { %v1753_v42 = vpack.c.bf16 %v1717_v56, %v1714_v52  ;;  %v1354_v44 = vadd.f32 %v1353_v40, %v3342_v34  ;;  %v1466_v48 = vpop.f32.mrf.mxu1  ;;  %v1465_v57 = vadd.f32 %v1464_v62, %v1352_v61  ;;  %v1719_v14 = vmax.f32 %v1463_v19, 0.0 }
 0x1dd   :  { %v1355_v59 = vpop.f32.mrf.mxu0 }
 0x1de   :  { %v1467_v58 = vadd.f32 %v1466_v48, %v1354_v44  ;;  %v1356_v17 = vadd.f32 %v1355_v59, %v3338_v28  ;;  %v1468_v23 = vpop.f32.mrf.mxu1  ;;  %2015 = vmatprep.mubr.bf16.mxu0 %v1753_v42  ;;  %v1720_v18 = vmax.f32 %v1465_v57, 0.0 }
 0x1df   :  { %v1359_v24 = vpop.f32.mrf.mxu0  ;;  %2016 = vmatmul.mubr.bf16.gmra.mxu0 %v1752_v4 }
 0x1e0   :  { %v1469_v38 = vadd.f32 %v1468_v23, %v1356_v17  ;;  %v1472_v12 = vpop.f32.mrf.mxu1  ;;  %v1722_v0 = vmax.f32 %v1467_v58, 0.0  ;;  %v1360_v5 = vadd.f32 %v1359_v24, %v3342_v34 }
 0x1e1   :  { %v1361_v13 = vpop.f32.mrf.mxu0 }
 0x1e2   :  { %v1723_v8 = vmax.f32 %v1469_v38, 0.0  ;;  %v1362_v1 = vadd.f32 %v1361_v13, %v3338_v28  ;;  %v1474_v9 = vpop.f32.mrf.mxu1  ;;  %v1755_v11 = vpack.c.bf16 %v1722_v0, %v1719_v14  ;;  %v1473_v20 = vadd.f32 %v1472_v12, %v1360_v5 }
 0x1e3   :  { %v1363_v6 = vpop.f32.mrf.mxu0 }
 0x1e4   :  { %v1756_v7 = vpack.c.bf16 %v1723_v8, %v1720_v18  ;;  %v1364_v27 = vadd.f32 %v1363_v6, %v3342_v34  ;;  %v1476_v60 = vpop.f32.mrf.mxu1  ;;  %v1475_v22 = vadd.f32 %v1474_v9, %v1362_v1  ;;  %v1725_v32 = vmax.f32 %v1473_v20, 0.0  ;;  %v3422_v9 = vld [vmem:[#allocation10_spill] sm:$0xff] }
 0x1e5   :  { %v1365_v15 = vpop.f32.mrf.mxu0  ;;  %v3378_v14 = vrot.slane %v3334_v21, %v3422_v9 }
 0x1e6   :  { %v1477_v46 = vadd.f32 %v1476_v60, %v1364_v27  ;;  %v1366_v54 = vadd.f32 %v1365_v15, %v3338_v28  ;;  %v1478_v16 = vpop.f32.mrf.mxu1  ;;  %2023 = vmatprep.mubr.bf16.mxu0 %v1756_v7  ;;  %v1726_v3 = vmax.f32 %v1475_v22, 0.0 }
 0x1e7   :  { %v1369_v49 = vpop.f32.mrf.mxu0  ;;  %2024 = vmatmul.mubr.bf16.gmra.mxu0 %v1755_v11 }
 0x1e8   :  { %v1479_v45 = vadd.f32 %v1478_v16, %v1366_v54  ;;  %v1482_v53 = vpop.f32.mrf.mxu1  ;;  %v1728_v63 = vmax.f32 %v1477_v46, 0.0  ;;  %v1370_v33 = vadd.f32 %v1369_v49, %v3342_v34 }
 0x1e9   :  { %v1371_v50 = vpop.f32.mrf.mxu0 }
 0x1ea   :  { %v1729_v55 = vmax.f32 %v1479_v45, 0.0  ;;  %v1372_v37 = vadd.f32 %v1371_v50, %v3338_v28  ;;  %v1484_v41 = vpop.f32.mrf.mxu1  ;;  %v1758_v36 = vpack.c.bf16 %v1728_v63, %v1725_v32  ;;  %v1483_v35 = vadd.f32 %v1482_v53, %v1370_v33 }
 0x1eb   :  { %v1373_v43 = vpop.f32.mrf.mxu0 }
 0x1ec   :  { %v1759_v29 = vpack.c.bf16 %v1729_v55, %v1726_v3  ;;  %v1374_v26 = vadd.f32 %v1373_v43, %v3342_v34  ;;  %v1486_v30 = vpop.f32.mrf.mxu1  ;;  %v1485_v25 = vadd.f32 %v1484_v41, %v1372_v37  ;;  %v1731_v48 = vmax.f32 %v1483_v35, 0.0 }
 0x1ed   :  { %v1375_v10 = vpop.f32.mrf.mxu0 }
 0x1ee   :  { %v1487_v47 = vadd.f32 %v1486_v30, %v1374_v26  ;;  %v1376_v31 = vadd.f32 %v1375_v10, %v3338_v28  ;;  %v1488_v51 = vpop.f32.mrf.mxu1  ;;  %2031 = vmatprep.mubr.bf16.mxu0 %v1759_v29  ;;  %v1732_v2 = vmax.f32 %v1485_v25, 0.0 }
 0x1ef   :  { %v1379_v52 = vpop.f32.mrf.mxu0  ;;  %2032 = vmatmul.mubr.bf16.gmra.mxu0 %v1758_v36 }
 0x1f0   :  { %v1489_v56 = vadd.f32 %v1488_v51, %v1376_v31  ;;  %v1492_v61 = vpop.f32.mrf.mxu1  ;;  %v1734_v62 = vmax.f32 %v1487_v47, 0.0  ;;  %v1380_v4 = vadd.f32 %v1379_v52, %v3342_v34 }
 0x1f1   :  { %v1381_v39 = vpop.f32.mrf.mxu0 }
 0x1f2   :  { %v1735_v40 = vmax.f32 %v1489_v56, 0.0  ;;  %v1382_v42 = vadd.f32 %v1381_v39, %v3338_v28  ;;  %v1494_v44 = vpop.f32.mrf.mxu1  ;;  %v1761_v23 = vpack.c.bf16 %v1734_v62, %v1731_v48  ;;  %v1493_v13 = vadd.f32 %v1492_v61, %v1380_v4 }
 0x1f3   :  { %v1383_v59 = vpop.f32.mrf.mxu0 }
 0x1f4   :  { %v1762_v57 = vpack.c.bf16 %v1735_v40, %v1732_v2  ;;  %v1384_v58 = vadd.f32 %v1383_v59, %v3342_v34  ;;  %v1496_v17 = vpop.f32.mrf.mxu1  ;;  %v1495_v24 = vadd.f32 %v1494_v44, %v1382_v42  ;;  %v1737_v11 = vmax.f32 %v1493_v13, 0.0 }
 0x1f5   :  { %v1385_v19 = vpop.f32.mrf.mxu0 }
 0x1f6   :  { %v1497_v38 = vadd.f32 %v1496_v17, %v1384_v58  ;;  %v1386_v12 = vadd.f32 %v1385_v19, %v3338_v28  ;;  %v1498_v0 = vpop.f32.mrf.mxu1  ;;  %2039 = vmatprep.mubr.bf16.mxu0 %v1762_v57  ;;  %v1738_v6 = vmax.f32 %v1495_v24, 0.0 }
 0x1f7   :  { %v2364_v18 = vpop.f32.mrf.mxu0  ;;  %2040 = vmatmul.mubr.bf16.gmra.mxu0 %v1761_v23 }
 0x1f8   :  { %v1499_v8 = vadd.f32 %v1498_v0, %v1386_v12  ;;  %v2428_v1 = vpop.f32.mrf.mxu1  ;;  %v1740_v5 = vmax.f32 %v1497_v38, 0.0 }
 0x1f9   :  { %v2365_v34 = vpop.f32.mrf.mxu0 }
 0x1fa   :  { %v1741_v7 = vmax.f32 %v1499_v8, 0.0  ;;  %v2366_v27 = vadd.f32 %v2365_v34, %v2364_v18  ;;  %v2429_v60 = vpop.f32.mrf.mxu1  ;;  %v1764_v54 = vpack.c.bf16 %v1740_v5, %v1737_v11 }
 0x1fb   :  { %v2367_v15 = vpop.f32.mrf.mxu0  ;;  %v2430_v20 = vadd.f32 %v2429_v60, %v2428_v1 }
 0x1fc   :  { %v1765_v28 = vpack.c.bf16 %v1741_v7, %v1738_v6  ;;  %v1536_v22 = vadd.f32 %v2366_v27, %v3378_v14  ;;  %v2431_v46 = vpop.f32.mrf.mxu1 }
 0x1fd   :  { %v2368_v16 = vpop.f32.mrf.mxu0 }
 0x1fe   :  { %v2369_v49 = vadd.f32 %v2368_v16, %v2367_v15  ;;  %v2432_v45 = vpop.f32.mrf.mxu1  ;;  %2047 = vmatprep.mubr.bf16.mxu0 %v1765_v28  ;;  %v1633_v53 = vadd.f32 %v2430_v20, %v1536_v22 }
 0x1ff   :  { %v2370_v21 = vpop.f32.mrf.mxu0  ;;  %2048 = vmatmul.mubr.bf16.gmra.mxu0 %v1764_v54  ;;  %v2433_v50 = vadd.f32 %v2432_v45, %v2431_v46 }
 0x200   :  { %v1539_v63 = vadd.f32 %v2369_v49, %v3378_v14  ;;  %v2434_v3 = vpop.f32.mrf.mxu1  ;;  %v1697_v43 = vmax.f32 %v1633_v53, 0.0 }
 0x201   :  { %v2371_v55 = vpop.f32.mrf.mxu0 }
 0x202   :  { %v1636_v37 = vadd.f32 %v2433_v50, %v1539_v63  ;;  %v2372_v41 = vadd.f32 %v2371_v55, %v2370_v21  ;;  %v2435_v32 = vpop.f32.mrf.mxu1 }
 0x203   :  { %v2373_v33 = vpop.f32.mrf.mxu0  ;;  %v2436_v10 = vadd.f32 %v2435_v32, %v2434_v3 }
 0x204   :  { %v1700_v29 = vmax.f32 %v1636_v37, 0.0  ;;  %v1544_v26 = vadd.f32 %v2372_v41, %v3378_v14  ;;  %v2437_v30 = vpop.f32.mrf.mxu1 }
 0x205   :  { %v2374_v36 = vpop.f32.mrf.mxu0 }
 0x206   :  { %v2375_v25 = vadd.f32 %v2374_v36, %v2373_v33  ;;  %v2438_v47 = vpop.f32.mrf.mxu1  ;;  %v1745_v31 = vpack.c.bf16 %v1700_v29, %v1697_v43  ;;  %v1641_v35 = vadd.f32 %v2436_v10, %v1544_v26 }
 0x207   :  { %v2376_v51 = vpop.f32.mrf.mxu0  ;;  %v2439_v56 = vadd.f32 %v2438_v47, %v2437_v30 }
 0x208   :  { %v1547_v52 = vadd.f32 %v2375_v25, %v3378_v14  ;;  %v2440_v61 = vpop.f32.mrf.mxu1  ;;  %2572 = vmatprep.mubr.bf16.mxu1 %v1745_v31  ;;  %v1703_v44 = vmax.f32 %v1641_v35, 0.0 }
 0x209   :  { %v2377_v62 = vpop.f32.mrf.mxu0 }
 0x20a   :  { %v1644_v39 = vadd.f32 %v2439_v56, %v1547_v52  ;;  %v2378_v2 = vadd.f32 %v2377_v62, %v2376_v51  ;;  %v2441_v40 = vpop.f32.mrf.mxu1 }
 0x20b   :  { %v2379_v42 = vpop.f32.mrf.mxu0  ;;  %v2442_v17 = vadd.f32 %v2441_v40, %v2440_v61 }
 0x20c   :  { %v1706_v48 = vmax.f32 %v1644_v39, 0.0  ;;  %v1552_v4 = vadd.f32 %v2378_v2, %v3378_v14  ;;  %v2443_v59 = vpop.f32.mrf.mxu1 }
 0x20d   :  { %v2380_v57 = vpop.f32.mrf.mxu0 }
 0x20e   :  { %v1748_v58 = vpack.c.bf16 %v1706_v48, %v1703_v44  ;;  %v2381_v23 = vadd.f32 %v2380_v57, %v2379_v42  ;;  %v2444_v19 = vpop.f32.mrf.mxu1  ;;  %v1649_v38 = vadd.f32 %v2442_v17, %v1552_v4 }
 0x20f   :  { %v2382_v24 = vpop.f32.mrf.mxu0  ;;  %v2445_v0 = vadd.f32 %v2444_v19, %v2443_v59 }
 0x210   :  { %v1555_v12 = vadd.f32 %v2381_v23, %v3378_v14  ;;  %v2446_v13 = vpop.f32.mrf.mxu1  ;;  %2573 = vmatmul.mubr.bf16.vlgmr.msra.gmra.mxu1 %v1748_v58  ;;  %v1709_v34 = vmax.f32 %v1649_v38, 0.0 }
 0x211   :  { %v2383_v18 = vpop.f32.mrf.mxu0 }
 0x212   :  { %v1652_v8 = vadd.f32 %v2445_v0, %v1555_v12  ;;  %v2384_v1 = vadd.f32 %v2383_v18, %v2382_v24  ;;  %v2447_v9 = vpop.f32.mrf.mxu1 }
 0x213   :  { %v2385_v5 = vpop.f32.mrf.mxu0  ;;  %v2448_v11 = vadd.f32 %v2447_v9, %v2446_v13 }
 0x214   :  { %v1712_v6 = vmax.f32 %v1652_v8, 0.0  ;;  %v1560_v7 = vadd.f32 %v2384_v1, %v3378_v14  ;;  %v2449_v27 = vpop.f32.mrf.mxu1 }
 0x215   :  { %v2386_v60 = vpop.f32.mrf.mxu0 }
 0x216   :  { %v2387_v15 = vadd.f32 %v2386_v60, %v2385_v5  ;;  %v2450_v28 = vpop.f32.mrf.mxu1  ;;  %v1751_v22 = vpack.c.bf16 %v1712_v6, %v1709_v34  ;;  %v1657_v54 = vadd.f32 %v2448_v11, %v1560_v7 }
 0x217   :  { %v2388_v46 = vpop.f32.mrf.mxu0  ;;  %v2451_v20 = vadd.f32 %v2450_v28, %v2449_v27 }
 0x218   :  { %v1563_v16 = vadd.f32 %v2387_v15, %v3378_v14  ;;  %v2452_v49 = vpop.f32.mrf.mxu1  ;;  %2576 = vmatprep.mubr.bf16.mxu1 %v1751_v22  ;;  %v1715_v3 = vmax.f32 %v1657_v54, 0.0 }
 0x219   :  { %v2389_v45 = vpop.f32.mrf.mxu0 }
 0x21a   :  { %v1660_v21 = vadd.f32 %v2451_v20, %v1563_v16  ;;  %v2390_v53 = vadd.f32 %v2389_v45, %v2388_v46  ;;  %v2453_v63 = vpop.f32.mrf.mxu1 }
 0x21b   :  { %v2391_v50 = vpop.f32.mrf.mxu0  ;;  %v2454_v33 = vadd.f32 %v2453_v63, %v2452_v49 }
 0x21c   :  { %v1718_v55 = vmax.f32 %v1660_v21, 0.0  ;;  %v1568_v37 = vadd.f32 %v2390_v53, %v3378_v14  ;;  %v2455_v41 = vpop.f32.mrf.mxu1 }
 0x21d   :  { %v2392_v32 = vpop.f32.mrf.mxu0 }
 0x21e   :  { %v2393_v43 = vadd.f32 %v2392_v32, %v2391_v50  ;;  %v2456_v29 = vpop.f32.mrf.mxu1  ;;  %v1754_v26 = vpack.c.bf16 %v1718_v55, %v1715_v3  ;;  %v1665_v36 = vadd.f32 %v2454_v33, %v1568_v37 }
 0x21f   :  { %v2394_v30 = vpop.f32.mrf.mxu0  ;;  %v2457_v25 = vadd.f32 %v2456_v29, %v2455_v41 }
 0x220   :  { %v1571_v10 = vadd.f32 %v2393_v43, %v3378_v14  ;;  %v2458_v47 = vpop.f32.mrf.mxu1  ;;  %2577 = vmatmul.mubr.bf16.gmra.mxu1 %v1754_v26  ;;  %v1721_v61 = vmax.f32 %v1665_v36, 0.0 }
 0x221   :  { %v2395_v31 = vpop.f32.mrf.mxu0 }
 0x222   :  { %v1668_v51 = vadd.f32 %v2457_v25, %v1571_v10  ;;  %v2396_v35 = vadd.f32 %v2395_v31, %v2394_v30  ;;  %v2459_v52 = vpop.f32.mrf.mxu1 }
 0x223   :  { %v2397_v56 = vpop.f32.mrf.mxu0  ;;  %v2460_v42 = vadd.f32 %v2459_v52, %v2458_v47 }
 0x224   :  { %v1724_v62 = vmax.f32 %v1668_v51, 0.0  ;;  %v1576_v39 = vadd.f32 %v2396_v35, %v3378_v14  ;;  %v2461_v2 = vpop.f32.mrf.mxu1 }
 0x225   :  { %v2398_v40 = vpop.f32.mrf.mxu0 }
 0x226   :  { %v2399_v44 = vadd.f32 %v2398_v40, %v2397_v56  ;;  %v2462_v48 = vpop.f32.mrf.mxu1  ;;  %v1757_v4 = vpack.c.bf16 %v1724_v62, %v1721_v61  ;;  %v1673_v57 = vadd.f32 %v2460_v42, %v1576_v39 }
 0x227   :  { %v2400_v59 = vpop.f32.mrf.mxu0  ;;  %v2463_v17 = vadd.f32 %v2462_v48, %v2461_v2 }
 0x228   :  { %v1579_v58 = vadd.f32 %v2399_v44, %v3378_v14  ;;  %v2464_v23 = vpop.f32.mrf.mxu1  ;;  %2580 = vmatprep.mubr.bf16.mxu1 %v1757_v4  ;;  %v1727_v13 = vmax.f32 %v1673_v57, 0.0 }
 0x229   :  { %v2401_v19 = vpop.f32.mrf.mxu0 }
 0x22a   :  { %v1676_v24 = vadd.f32 %v2463_v17, %v1579_v58  ;;  %v2402_v38 = vadd.f32 %v2401_v19, %v2400_v59  ;;  %v2465_v12 = vpop.f32.mrf.mxu1 }
 0x22b   :  { %v2403_v0 = vpop.f32.mrf.mxu0  ;;  %v2466_v5 = vadd.f32 %v2465_v12, %v2464_v23 }
 0x22c   :  { %v1730_v18 = vmax.f32 %v1676_v24, 0.0  ;;  %v1584_v8 = vadd.f32 %v2402_v38, %v3378_v14  ;;  %v2467_v1 = vpop.f32.mrf.mxu1 }
 0x22d   :  { %v2404_v9 = vpop.f32.mrf.mxu0 }
 0x22e   :  { %v2405_v34 = vadd.f32 %v2404_v9, %v2403_v0  ;;  %v2468_v6 = vpop.f32.mrf.mxu1  ;;  %v1760_v7 = vpack.c.bf16 %v1730_v18, %v1727_v13  ;;  %v1681_v60 = vadd.f32 %v2466_v5, %v1584_v8 }
 0x22f   :  { %v2406_v27 = vpop.f32.mrf.mxu0  ;;  %v2469_v15 = vadd.f32 %v2468_v6, %v2467_v1 }
 0x230   :  { %v1587_v11 = vadd.f32 %v2405_v34, %v3378_v14  ;;  %v2470_v28 = vpop.f32.mrf.mxu1  ;;  %2581 = vmatmul.mubr.bf16.gmra.mxu1 %v1760_v7  ;;  %v1733_v49 = vmax.f32 %v1681_v60, 0.0 }
 0x231   :  { %v2407_v22 = vpop.f32.mrf.mxu0 }
 0x232   :  { %v1684_v46 = vadd.f32 %v2469_v15, %v1587_v11  ;;  %v2408_v54 = vadd.f32 %v2407_v22, %v2406_v27  ;;  %v2471_v16 = vpop.f32.mrf.mxu1 }
 0x233   :  { %v2409_v20 = vpop.f32.mrf.mxu0  ;;  %v2472_v50 = vadd.f32 %v2471_v16, %v2470_v28 }
 0x234   :  { %v1736_v45 = vmax.f32 %v1684_v46, 0.0  ;;  %v1592_v21 = vadd.f32 %v2408_v54, %v3378_v14  ;;  %v2473_v53 = vpop.f32.mrf.mxu1 }
 0x235   :  { %v2410_v63 = vpop.f32.mrf.mxu0 }
 0x236   :  { %v2411_v3 = vadd.f32 %v2410_v63, %v2409_v20  ;;  %v2474_v55 = vpop.f32.mrf.mxu1  ;;  %v1763_v37 = vpack.c.bf16 %v1736_v45, %v1733_v49  ;;  %v1689_v41 = vadd.f32 %v2472_v50, %v1592_v21 }
 0x237   :  { %v2475_v33 = vadd.f32 %v2474_v55, %v2473_v53 }
 0x238   :  { %v1595_v32 = vadd.f32 %v2411_v3, %v3378_v14  ;;  %2584 = vmatprep.mubr.bf16.mxu1 %v1763_v37  ;;  %v1739_v29 = vmax.f32 %v1689_v41, 0.0 }
 0x23a   :  { %v1692_v43 = vadd.f32 %v2475_v33, %v1595_v32 }
 0x23c   :  { %v1742_v26 = vmax.f32 %v1692_v43, 0.0 }
 0x23e   :  { %v1766_v30 = vpack.c.bf16 %v1742_v26, %v1739_v29 }
 0x240   :  { %2585 = vmatmul.mubr.bf16.gmra.mxu1 %v1766_v30 }
 0x287   :  { %v2492_v36 = vpop.f32.mrf.mxu0 }
 0x289   :  { %v2493_v10 = vpop.f32.mrf.mxu0 }
 0x28a   :  { %v2494_v4 = vadd.f32 %v2493_v10, %v2492_v36 }
 0x28b   :  { %v2495_v25 = vpop.f32.mrf.mxu0 }
 0x28d   :  { %v2496_v47 = vpop.f32.mrf.mxu0 }
 0x28e   :  { %v2497_v23 = vadd.f32 %v2496_v47, %v2495_v25 }
 0x28f   :  { %v2498_v31 = vpop.f32.mrf.mxu0 }
 0x291   :  { %v2499_v51 = vpop.f32.mrf.mxu0 }
 0x292   :  { %v2500_v12 = vadd.f32 %v2499_v51, %v2498_v31 }
 0x293   :  { %v2501_v35 = vpop.f32.mrf.mxu0 }
 0x295   :  { %v2502_v52 = vpop.f32.mrf.mxu0 }
 0x296   :  { %v2503_v18 = vadd.f32 %v2502_v52, %v2501_v35 }
 0x297   :  { %v2504_v56 = vpop.f32.mrf.mxu0 }
 0x299   :  { %v2505_v61 = vpop.f32.mrf.mxu0 }
 0x29a   :  { %v2506_v5 = vadd.f32 %v2505_v61, %v2504_v56 }
 0x29b   :  { %v2507_v62 = vpop.f32.mrf.mxu0 }
 0x29d   :  { %v2508_v39 = vpop.f32.mrf.mxu0 }
 0x29e   :  { %v2509_v60 = vadd.f32 %v2508_v39, %v2507_v62 }
 0x29f   :  { %v2510_v14 = vpop.f32.mrf.mxu0 }
 0x2a1   :  { %v2511_v2 = vpop.f32.mrf.mxu0 }
 0x2a2   :  { %v2512_v22 = vadd.f32 %v2511_v2, %v2510_v14 }
 0x2a3   :  { %v2513_v40 = vpop.f32.mrf.mxu0 }
 0x2a5   :  { %v2514_v42 = vpop.f32.mrf.mxu0 }
 0x2a6   :  { %v2515_v16 = vadd.f32 %v2514_v42, %v2513_v40 }
 0x2a7   :  { %v2516_v44 = vpop.f32.mrf.mxu0 }
 0x2a9   :  { %v2517_v59 = vpop.f32.mrf.mxu0 }
 0x2aa   :  { %v2518_v21 = vadd.f32 %v2517_v59, %v2516_v44  ;;  %v2185_v44 = vld [vmem:[%s3409_s7] sm:$0x1] }
 0x2ab   :  { %v2519_v19 = vpop.f32.mrf.mxu0 }
 0x2ad   :  { %v2520_v0 = vpop.f32.mrf.mxu0 }
 0x2ae   :  { %v2521_v55 = vadd.f32 %v2520_v0, %v2519_v19 }
 0x2af   :  { %v2522_v8 = vpop.f32.mrf.mxu0 }
 0x2b1   :  { %v2523_v34 = vpop.f32.mrf.mxu0 }
 0x2b2   :  { %v2524_v33 = vadd.f32 %v2523_v34, %v2522_v8 }
 0x2b3   :  { %v2525_v11 = vpop.f32.mrf.mxu0 }
 0x2b5   :  { %v2526_v46 = vpop.f32.mrf.mxu0 }
 0x2b6   :  { %v2527_v26 = vadd.f32 %v2526_v46, %v2525_v11 }
 0x2b7   :  { %v2528_v20 = vpop.f32.mrf.mxu0 }
 0x2b9   :  { %v2529_v53 = vpop.f32.mrf.mxu0 }
 0x2ba   :  { %v2530_v25 = vadd.f32 %v2529_v53, %v2528_v20 }
 0x2bb   :  { %v2531_v37 = vpop.f32.mrf.mxu0 }
 0x2bd   :  { %v2532_v43 = vpop.f32.mrf.mxu0 }
 0x2be   :  { %v2533_v52 = vadd.f32 %v2532_v43, %v2531_v37 }
 0x2bf   :  { %v2534_v30 = vpop.f32.mrf.mxu0 }
 0x2c1   :  { %v2535_v47 = vpop.f32.mrf.mxu0 }
 0x2c2   :  { %v2536_v39 = vadd.f32 %v2535_v47, %v2534_v30 }
 0x2c3   :  { %v2537_v56 = vpop.f32.mrf.mxu0 }
 0x2c5   :  { %v2538_v14 = vpop.f32.mrf.mxu0 }
 0x2c6   :  { %v2539_v40 = vadd.f32 %v2538_v14, %v2537_v56 }
 0x2d0   :  { %v2574_v48 = vpop.f32.mrf.mxu1 }
 0x2d1   :  { %v2099_v13 = vadd.f32 %v2574_v48, %v2500_v12 }
 0x2d2   :  { %v2090_v57 = vpop.f32.mrf.mxu1 }
 0x2d3   :  { %v2091_v58 = vadd.f32 %v2494_v4, %v2090_v57 }
 0x2d4   :  { %v2575_v17 = vpop.f32.mrf.mxu1 }
 0x2d5   :  { %2153 = vxpose.xlu0.b32.start [1/16] (narrow) %v2091_v58, 8  ;;  %v2102_v1 = vadd.f32 %v2575_v17, %v2503_v18 }
 0x2d6   :  { %v2093_v24 = vpop.f32.mrf.mxu1 }
 0x2d7   :  { %v2094_v38 = vadd.f32 %v2497_v23, %v2093_v24 }
 0x2d9   :  { %2154 = vxpose.xlu0.b32.cont [2/16] (narrow) %v2094_v38, 8 }
 0x2dd   :  { %2155 = vxpose.xlu0.b32.cont [3/16] (narrow) %v2099_v13, 8 }
 0x2e0   :  { %v2578_v9 = vpop.f32.mrf.mxu1 }
 0x2e1   :  { %2156 = vxpose.xlu0.b32.cont [4/16] (narrow) %v2102_v1, 8  ;;  %v2115_v54 = vadd.f32 %v2578_v9, %v2512_v22 }
 0x2e2   :  { %v2106_v6 = vpop.f32.mrf.mxu1 }
 0x2e3   :  { %v2107_v7 = vadd.f32 %v2506_v5, %v2106_v6 }
 0x2e4   :  { %v2579_v27 = vpop.f32.mrf.mxu1 }
 0x2e5   :  { %2157 = vxpose.xlu0.b32.cont [5/16] (narrow) %v2107_v7, 8  ;;  %v2118_v49 = vadd.f32 %v2579_v27, %v2515_v16 }
 0x2e6   :  { %v2109_v15 = vpop.f32.mrf.mxu1 }
 0x2e7   :  { %v2110_v28 = vadd.f32 %v2509_v60, %v2109_v15 }
 0x2e9   :  { %2158 = vxpose.xlu0.b32.cont [6/16] (narrow) %v2110_v28, 8 }
 0x2ed   :  { %2159 = vxpose.xlu0.b32.cont [7/16] (narrow) %v2115_v54, 8 }
 0x2f0   :  { %v2582_v45 = vpop.f32.mrf.mxu1 }
 0x2f1   :  { %2160 = vxpose.xlu0.b32.cont [8/16] (narrow) %v2118_v49, 8  ;;  %v2131_v29 = vadd.f32 %v2582_v45, %v2524_v33 }
 0x2f2   :  { %v2122_v63 = vpop.f32.mrf.mxu1 }
 0x2f3   :  { %v2123_v50 = vadd.f32 %v2518_v21, %v2122_v63 }
 0x2f4   :  { %v2583_v3 = vpop.f32.mrf.mxu1 }
 0x2f5   :  { %2161 = vxpose.xlu0.b32.cont [9/16] (narrow) %v2123_v50, 8  ;;  %v2134_v36 = vadd.f32 %v2583_v3, %v2527_v26 }
 0x2f6   :  { %v2125_v41 = vpop.f32.mrf.mxu1 }
 0x2f7   :  { %v2126_v32 = vadd.f32 %v2521_v55, %v2125_v41 }
 0x2f9   :  { %2162 = vxpose.xlu0.b32.cont [10/16] (narrow) %v2126_v32, 8 }
 0x2fd   :  { %2163 = vxpose.xlu0.b32.cont [11/16] (narrow) %v2131_v29, 8 }
 0x300   :  { %v2586_v10 = vpop.f32.mrf.mxu1 }
 0x301   :  { %2164 = vxpose.xlu0.b32.cont [12/16] (narrow) %v2134_v36, 8  ;;  %v2147_v2 = vadd.f32 %v2586_v10, %v2536_v39 }
 0x302   :  { %v2138_v31 = vpop.f32.mrf.mxu1 }
 0x303   :  { %v2139_v51 = vadd.f32 %v2530_v25, %v2138_v31 }
 0x304   :  { %v2587_v35 = vpop.f32.mrf.mxu1 }
 0x305   :  { %2165 = vxpose.xlu0.b32.cont [13/16] (narrow) %v2139_v51, 8  ;;  %v2150_v42 = vadd.f32 %v2587_v35, %v2539_v40 }
 0x306   :  { %v2141_v61 = vpop.f32.mrf.mxu1 }
 0x307   :  { %v2142_v62 = vadd.f32 %v2533_v52, %v2141_v61 }
 0x309   :  { %2166 = vxpose.xlu0.b32.cont [14/16] (narrow) %v2142_v62, 8 }
 0x30d   :  { %2167 = vxpose.xlu0.b32.cont [15/16] (narrow) %v2147_v2, 8 }
 0x311   :  { %2168 = vxpose.xlu0.b32.end [16/16] (narrow) %v2150_v42, 8 }
 0x351   :  { %v2169_v48 = vpop.trf.xlu0 }
 0x352   :  { %v2186_v4 = vadd.f32 %v2185_v44, %v2169_v48 }
 0x354   :  { %2187 = vst [vmem:[%s3410_s8] sm:$0x1] %v2186_v4 }
 0x355   :  { %2192 = vsyncpa [#allocation3], 1 }
 0x356   :  { %2193 = vsyncpa [#allocation5], 1 }

</bundles_post_ra>
